<compile_context>
chip_gen: v7x
topology: tpu7x:2x2x1
jax: 0.10.0
libtpu: 0.0.40
codegen_flags: <defaults>
</compile_context>

<pallas_src>
import math

import jax
import jax.numpy as jnp
from jax.experimental import pallas as pl
from jax.experimental.pallas import tpu as pltpu


GROUP = 64                  # batch rows packed per 128-lane input row
IN_LANES = 2 * GROUP        # 128  (lane-dense input rows)
OUT_LANES = 12 * GROUP      # 768  (lane-dense replicated output rows = 6 vregs)
MAX_BLOCK_R = 1024          # 64K batch rows / block -> ~3 MiB output block


def _affine_replicate_kernel(m_ref, b_ref, x_ref, o_ref):
    # m_ref: (128, 768) folded-weight + replication matrix (VMEM, grid-resident)
    # b_ref: (1, 768)   replicated bias row              (VMEM, grid-resident)
    # x_ref: (block_r, 128) lane-dense interleaved [x0, x1] pairs
    # o_ref: (block_r, 768) lane-dense replicated output rows
    o_ref[...] = (
        jnp.dot(
            x_ref[...],
            m_ref[...],
            preferred_element_type=jnp.float32,
            precision=jax.lax.Precision.HIGHEST,
        )
        + b_ref[...]
    )


@jax.jit
def model_forward(x, w1, b1, w2, b2):
    B = x.shape[0]
    x = x.astype(jnp.float32)

    # ---- Fold the two Linears (exact elementwise f32) --------------------
    # y = (x @ w1.T + b1) @ w2.T + b2 = x @ (w2 @ w1).T + (w2 @ b1 + b2)
    W = w2[:, 0:1] * w1[0:1, :] + w2[:, 1:2] * w1[1:2, :]       # (2, 2)
    bias = w2[:, 0] * b1[0] + w2[:, 1] * b1[1] + b2             # (2,)

    # ---- Constant lane-expansion matrix M (128, 768) and bias row --------
    # M[2j + d, 12j + 2s + c] = W[c, d]   for j in [0,64), s in [0,6), c,d in {0,1}
    rows = jnp.arange(IN_LANES)
    cols = jnp.arange(OUT_LANES)
    d_r, j_r = rows % 2, rows // 2          # input component / pair index
    c_c, j_c = cols % 2, cols // 12         # output component / pair index
    M = jnp.where(
        j_r[:, None] == j_c[None, :],
        W[c_c[None, :], d_r[:, None]],
        0.0,
    ).astype(jnp.float32)                                        # (128, 768)
    bias_row = bias[c_c].reshape(1, OUT_LANES).astype(jnp.float32)

    # ---- Lane-dense view of the input, padded to whole blocks ------------
    r = max(1, math.ceil(B / GROUP))
    block_r = min(r, MAX_BLOCK_R)
    r_pad = math.ceil(r / block_r) * block_r
    b_pad = r_pad * GROUP
    if b_pad != B:
        x = jnp.pad(x, ((0, b_pad - B), (0, 0)))
    x2 = x.reshape(r_pad, IN_LANES)          # free reshape (same bytes)

    out2 = pl.pallas_call(
        _affine_replicate_kernel,
        out_shape=jax.ShapeDtypeStruct((r_pad, OUT_LANES), jnp.float32),
        grid=(r_pad // block_r,),
        in_specs=[
            pl.BlockSpec((IN_LANES, OUT_LANES), lambda i: (0, 0)),  # M resident
            pl.BlockSpec((1, OUT_LANES), lambda i: (0, 0)),         # bias resident
            pl.BlockSpec((block_r, IN_LANES), lambda i: (i, 0)),    # x rows
        ],
        out_specs=pl.BlockSpec((block_r, OUT_LANES), lambda i: (i, 0)),
        compiler_params=pltpu.CompilerParams(
            dimension_semantics=("parallel",),
        ),
    )(M, bias_row, x2)

    # (r_pad, 768) -> (b_pad, 6, 2) is a free row-major reshape (same bytes).
    out = out2.reshape(b_pad, 6, 2)
    if b_pad != B:
        out = out[:B]
    return out


def reference_forward(x, w1, b1, w2, b2):
    hi = jax.lax.Precision.HIGHEST
    y = jnp.dot(x, w1.T, precision=hi) + b1
    y = jnp.dot(y, w2.T, precision=hi) + b2
    y = jnp.stack((y, y, y), axis=1)       # (B, 3, 2)
    y = jnp.concatenate([y, y], axis=1)    # (B, 6, 2)
    return y


if __name__ == "__main__":
    key = jax.random.PRNGKey(0)
    kx, k1w, k1b, k2w, k2b = jax.random.split(key, 5)

    # Parameters matching nn.Linear(2, 2) x 2
    w1 = jax.random.normal(k1w, (2, 2), dtype=jnp.float32) * 0.5
    b1 = jax.random.normal(k1b, (2,), dtype=jnp.float32) * 0.1
    w2 = jax.random.normal(k2w, (2, 2), dtype=jnp.float32) * 0.5
    b2 = jax.random.normal(k2b, (2,), dtype=jnp.float32) * 0.1

    # B=128: lane-dense aligned path (no padding). B=8: ragged/padded path.
    for B in (128, 8):
        xb = jax.random.normal(jax.random.fold_in(kx, B), (B, 2), dtype=jnp.float32)
        out = jax.block_until_ready(model_forward(xb, w1, b1, w2, b2))
        ref = reference_forward(xb, w1, b1, w2, b2)
        assert out.shape == (B, 6, 2), out.shape
        assert jnp.allclose(out, ref, atol=1e-5, rtol=1e-5), f"mismatch at B={B}"

    print("KERNEL_OK")
</pallas_src>

<mosaic_0001>
module attributes {stable_mosaic.version = 11 : i64} {
  func.func @_affine_replicate_kernel(%arg0: i32, %arg1: memref<128x768xf32, #tpu.memory_space<vmem>>, %arg2: memref<1x768xf32, #tpu.memory_space<vmem>>, %arg3: memref<2x128xf32, #tpu.memory_space<vmem>>, %arg4: memref<2x768xf32, #tpu.memory_space<vmem>>) attributes {dimension_semantics = [#tpu.dimension_semantics<parallel>], iteration_bounds = array<i64: 1>, scalar_prefetch = 0 : i64, scratch_operands = 0 : i64, tpu.core_type = #tpu.core_type<tc>, window_params = [{pipeline_mode = #tpu.pipeline_mode<synchronous>, transform_indices = @transform_0, window_bounds = array<i64: 128, 768>}, {pipeline_mode = #tpu.pipeline_mode<synchronous>, transform_indices = @transform_1, window_bounds = array<i64: 1, 768>}, {transform_indices = @transform_2, window_bounds = array<i64: 2, 128>}, {transform_indices = @transform_3, window_bounds = array<i64: 2, 768>}]} {
    %c0 = arith.constant 0 : index
    %c0_0 = arith.constant 0 : index
    %0 = vector.load %arg3[%c0, %c0_0] : memref<2x128xf32, #tpu.memory_space<vmem>>, vector<2x128xf32>
    %c0_1 = arith.constant 0 : index
    %c0_2 = arith.constant 0 : index
    %1 = vector.load %arg1[%c0_1, %c0_2] : memref<128x768xf32, #tpu.memory_space<vmem>>, vector<128x768xf32>
    %cst = arith.constant dense<0.000000e+00> : vector<2x768xf32>
    %2 = tpu.matmul %0, %1, %cst {dimension_numbers = #tpu.dot_dimension_numbers<[1], [0], [0], [1], [0, 0, 1, 1], [], []>, precision = #tpu.contract_precision<fp32>} : vector<2x128xf32>, vector<128x768xf32>, vector<2x768xf32> -> vector<2x768xf32>
    %c0_3 = arith.constant 0 : index
    %c0_4 = arith.constant 0 : index
    %3 = vector.load %arg2[%c0_3, %c0_4] : memref<1x768xf32, #tpu.memory_space<vmem>>, vector<1x768xf32>
    %4 = vector.broadcast %3 : vector<1x768xf32> to vector<2x768xf32>
    %5 = arith.addf %2, %4 : vector<2x768xf32>
    %c0_5 = arith.constant 0 : index
    %c0_6 = arith.constant 0 : index
    %6 = vector.load %arg4[%c0_5, %c0_6] : memref<2x768xf32, #tpu.memory_space<vmem>>, vector<2x768xf32>
    tpu.vector_store %arg4[%c0_5, %c0_6], %5 {strides = array<i32>} : memref<2x768xf32, #tpu.memory_space<vmem>>, vector<2x768xf32>,
    return
  }
  func.func @transform_0(%arg0: i32) -> (i32, i32) {
    %c0_i32 = arith.constant 0 : i32
    %c0_i32_0 = arith.constant 0 : i32
    %c0_i32_1 = arith.constant 0 : i32
    return %c0_i32, %c0_i32_0 : i32, i32
  }
  func.func @transform_1(%arg0: i32) -> (i32, i32) {
    %c0_i32 = arith.constant 0 : i32
    %c0_i32_0 = arith.constant 0 : i32
    %c0_i32_1 = arith.constant 0 : i32
    return %c0_i32, %c0_i32_0 : i32, i32
  }
  func.func @transform_2(%arg0: i32) -> (i32, i32) {
    %c0_i32 = arith.constant 0 : i32
    %c0_i32_0 = arith.constant 0 : i32
    return %arg0, %c0_i32 : i32, i32
  }
  func.func @transform_3(%arg0: i32) -> (i32, i32) {
    %c0_i32 = arith.constant 0 : i32
    %c0_i32_0 = arith.constant 0 : i32
    return %arg0, %c0_i32 : i32, i32
  }
}

</mosaic_0001>

<bundles_post_ra>
// kernel: model_forward.1
= control target key start
LH: loop header
LB: loop body
LE: loop exit
PB: predicated region body
PF: predicated region fallthrough
CT: control target
= control target key end

     0   :  { %v4916_v3 = vmov 0.0   ;;  %s4912_s0 = inlined_call_operand.vmem [shape: f32[128,768], index: 0, kind: input, shape index: {}]   ;;  %s4913_s2 = inlined_call_operand.vmem [shape: f32[2,128], index: 2, kind: input, shape index: {}]   ;;  %s4914_s1 = inlined_call_operand.vmem [shape: f32[1,768], index: 1, kind: input, shape index: {}]   ;;  %s4915_s3 = inlined_call_operand.vmem [shape: f32[2,768], index: 3, kind: output, shape index: {}]  }
   0x1   :  { %v16_v0 = vld [vmem:[%s4912_s0 + $0x8] sm:$0xff]  ;;  %v22_v1 = vld [vmem:[%s4912_s0 + $0x38] sm:$0xff]  ;;  %v15_v2 = vld [vmem:[%s4912_s0] sm:$0xff]  ;;  %239 = vmatprep.mubr.f32.mxu1 %v4916_v3  ;;  %716 = vmatprep.mubr.f32.mxu0 %v4916_v3 }
   0x2   :  { %v143_v4 = vand.u32 4294901760, %v16_v0  ;;  %v147_v5 = vand.u32 4294901760, %v22_v1  ;;  %v21_v6 = vld [vmem:[%s4912_s0 + $0x30] sm:$0xff]  ;;  %v145_v7 = vand.u32 4294901760, %v15_v2  ;;  %v28_v8 = vld [vmem:[%s4912_s0 + $0x68] sm:$0xff]  ;;  %v34_v9 = vld [vmem:[%s4912_s0 + $0x98] sm:$0xff] }
   0x3   :  { %v149_v10 = vand.u32 4294901760, %v21_v6  ;;  %v151_v11 = vand.u32 4294901760, %v28_v8  ;;  %v155_v12 = vand.u32 4294901760, %v34_v9  ;;  %v27_v13 = vld [vmem:[%s4912_s0 + $0x60] sm:$0xff]  ;;  %v33_v14 = vld [vmem:[%s4912_s0 + $0x90] sm:$0xff]  ;;  %v40_v15 = vld [vmem:[%s4912_s0 + $0xc8] sm:$0xff] }
   0x4   :  { %v3413_v16 = vpack.c.bf16 %v147_v5, %v143_v4  ;;  %v3415_v17 = vsub.f32 %v16_v0, %v143_v4  ;;  %v3417_v18 = vsub.f32 %v22_v1, %v147_v5  ;;  %v46_v19 = vld [vmem:[%s4912_s0 + $0xf8] sm:$0xff]  ;;  %v39_v20 = vld [vmem:[%s4912_s0 + $0xc0] sm:$0xff]  ;;  %v45_v21 = vld [vmem:[%s4912_s0 + $0xf0] sm:$0xff]  ;;  %v3430_v23 = vsub.f32 %v15_v2, %v145_v7 }
   0x5   :  { %v3428_v22 = vpack.c.bf16 %v149_v10, %v145_v7  ;;  %v3432_v24 = vsub.f32 %v21_v6, %v149_v10  ;;  %v3434_v25 = vpack.c.bf16 %v155_v12, %v151_v11  ;;  %v52_v26 = vld [vmem:[%s4912_s0 + $0x128] sm:$0xff]  ;;  %v58_v27 = vld [vmem:[%s4912_s0 + $0x158] sm:$0xff]  ;;  %v3444_v28 = vsub.f32 %v28_v8, %v151_v11  ;;  %v51_v40 = vld [vmem:[%s4912_s0 + $0x120] sm:$0xff] }
   0x6   :  { %5154 = vst [vmem:[#allocation2_spill] sm:$0xff] %v3413_v16  ;;  %2749 = vmatprep.subr.bf16.mxu1 %v3413_v16  ;;  %2845 = vmatprep.subr.bf16.mxu0 %v3413_v16  ;;  %v153_v29 = vand.u32 4294901760, %v27_v13  ;;  %v157_v30 = vand.u32 4294901760, %v33_v14  ;;  %v159_v31 = vand.u32 4294901760, %v40_v15  ;;  %v163_v32 = vand.u32 4294901760, %v46_v19  ;;  %v57_v41 = vld [vmem:[%s4912_s0 + $0x150] sm:$0xff] }
   0x7   :  { %5155 = vst [vmem:[#allocation3_spill] sm:$0xff] %v3428_v22  ;;  %5156 = vst [vmem:[#allocation4_spill] sm:$0xff] %v3434_v25  ;;  %2751 = vmatpush1.bf16.msra.mxu1 %v3428_v22  ;;  %2847 = vmatpush1.bf16.msra.mxu0 %v3428_v22  ;;  %v161_v33 = vand.u32 4294901760, %v39_v20  ;;  %v165_v34 = vand.u32 4294901760, %v45_v21  ;;  %v167_v35 = vand.u32 4294901760, %v52_v26  ;;  %v3449_v36 = vsub.f32 %v34_v9, %v155_v12  ;;  %v64_v42 = vld [vmem:[%s4912_s0 + $0x188] sm:$0xff] }
   0x8   :  { %2753 = vmatprep.subr.bf16.mxu1 %v3434_v25  ;;  %2849 = vmatprep.subr.bf16.mxu0 %v3434_v25  ;;  %v3452_v37 = vpack.c.bf16 %v157_v30, %v153_v29  ;;  %v3454_v38 = vsub.f32 %v27_v13, %v153_v29  ;;  %v171_v39 = vand.u32 4294901760, %v58_v27  ;;  %v3465_v43 = vsub.f32 %v33_v14, %v157_v30  ;;  %v70_v47 = vld [vmem:[%s4912_s0 + $0x1b8] sm:$0xff]  ;;  %v63_v48 = vld [vmem:[%s4912_s0 + $0x180] sm:$0xff]  ;;  %v69_v49 = vld [vmem:[%s4912_s0 + $0x1b0] sm:$0xff] }
   0x9   :  { %v3467_v44 = vpack.c.bf16 %v163_v32, %v159_v31  ;;  %v3469_v45 = vsub.f32 %v40_v15, %v159_v31  ;;  %v3471_v46 = vsub.f32 %v46_v19, %v163_v32  ;;  %v3482_v50 = vpack.c.bf16 %v165_v34, %v161_v33  ;;  %v76_v54 = vld [vmem:[%s4912_s0 + $0x1e8] sm:$0xff]  ;;  %v82_v63 = vld [vmem:[%s4912_s0 + $0x218] sm:$0xff]  ;;  %v75_v0 = vld [vmem:[%s4912_s0 + $0x1e0] sm:$0xff] }
   0xa   :  { %5157 = vst [vmem:[#allocation5_spill] sm:$0xff] %v3452_v37  ;;  %v3484_v51 = vsub.f32 %v39_v20, %v161_v33  ;;  %v3486_v52 = vsub.f32 %v45_v21, %v165_v34  ;;  %v3488_v53 = vpack.c.bf16 %v171_v39, %v167_v35  ;;  %v3495_v55 = vsub.f32 %v52_v26, %v167_v35  ;;  %v81_v1 = vld [vmem:[%s4912_s0 + $0x210] sm:$0xff]  ;;  %v88_v7 = vld [vmem:[%s4912_s0 + $0x248] sm:$0xff]  ;;  %v94_v8 = vld [vmem:[%s4912_s0 + $0x278] sm:$0xff] }
   0xb   :  { %5158 = vst [vmem:[#allocation6_spill] sm:$0xff] %v3467_v44  ;;  %5159 = vst [vmem:[#allocation7_spill] sm:$0xff] %v3482_v50  ;;  %2755 = vmatpush1.bf16.msra.mxu1 %v3452_v37  ;;  %2851 = vmatpush1.bf16.msra.mxu0 %v3452_v37  ;;  %v169_v56 = vand.u32 4294901760, %v51_v40  ;;  %v173_v57 = vand.u32 4294901760, %v57_v41  ;;  %v175_v58 = vand.u32 4294901760, %v64_v42  ;;  %v3499_v59 = vsub.f32 %v58_v27, %v171_v39  ;;  %v87_v9 = vld [vmem:[%s4912_s0 + $0x240] sm:$0xff] }
   0xc   :  { %5160 = vst [vmem:[#allocation8_spill] sm:$0xff] %v3488_v53  ;;  %2757 = vmatprep.subr.bf16.mxu1 %v3467_v44  ;;  %2853 = vmatprep.subr.bf16.mxu0 %v3467_v44  ;;  %v179_v60 = vand.u32 4294901760, %v70_v47  ;;  %v177_v61 = vand.u32 4294901760, %v63_v48  ;;  %v181_v62 = vand.u32 4294901760, %v69_v49  ;;  %v183_v6 = vand.u32 4294901760, %v76_v54  ;;  %v93_v14 = vld [vmem:[%s4912_s0 + $0x270] sm:$0xff] }
   0xd   :  { %v3510_v2 = vpack.c.bf16 %v173_v57, %v169_v56  ;;  %v3512_v4 = vsub.f32 %v51_v40, %v169_v56  ;;  %v3514_v5 = vsub.f32 %v57_v41, %v173_v57  ;;  %v3527_v11 = vsub.f32 %v64_v42, %v175_v58  ;;  %v100_v31 = vld [vmem:[%s4912_s0 + $0x2a8] sm:$0xff]  ;;  %v106_v39 = vld [vmem:[%s4912_s0 + $0x2d8] sm:$0xff]  ;;  %v99_v40 = vld [vmem:[%s4912_s0 + $0x2a0] sm:$0xff] }
   0xe   :  { %v3525_v10 = vpack.c.bf16 %v179_v60, %v175_v58  ;;  %v3529_v12 = vsub.f32 %v70_v47, %v179_v60  ;;  %v3531_v13 = vpack.c.bf16 %v181_v62, %v177_v61  ;;  %v3538_v15 = vsub.f32 %v63_v48, %v177_v61  ;;  %v105_v41 = vld [vmem:[%s4912_s0 + $0x2d0] sm:$0xff] }
   0xf   :  { %5161 = vst [vmem:[#allocation9_spill] sm:$0xff] %v3510_v2  ;;  %2759 = vmatpush1.bf16.msra.mxu1 %v3482_v50  ;;  %2855 = vmatpush1.bf16.msra.mxu0 %v3482_v50  ;;  %v3540_v19 = vsub.f32 %v69_v49, %v181_v62  ;;  %v187_v20 = vand.u32 4294901760, %v82_v63  ;;  %v185_v21 = vand.u32 4294901760, %v75_v0  ;;  %v189_v26 = vand.u32 4294901760, %v81_v1 }
  0x10   :  { %5162 = vst [vmem:[#allocation10_spill] sm:$0xff] %v3525_v10  ;;  %5163 = vst [vmem:[#allocation11_spill] sm:$0xff] %v3531_v13  ;;  %2761 = vmatprep.subr.bf16.mxu1 %v3488_v53  ;;  %2857 = vmatprep.subr.bf16.mxu0 %v3488_v53  ;;  %v191_v27 = vand.u32 4294901760, %v88_v7  ;;  %v195_v29 = vand.u32 4294901760, %v94_v8  ;;  %v193_v30 = vand.u32 4294901760, %v87_v9  ;;  %v3549_v33 = vsub.f32 %v76_v54, %v183_v6 }
  0x11   :  { %v3547_v32 = vpack.c.bf16 %v187_v20, %v183_v6  ;;  %v3551_v34 = vsub.f32 %v82_v63, %v187_v20  ;;  %v197_v35 = vand.u32 4294901760, %v93_v14  ;;  %v3562_v42 = vpack.c.bf16 %v189_v26, %v185_v21  ;;  %v14_v54 = vld [vmem:[%s4913_s2] sm:$0x3] }
  0x12   :  { %v3564_v47 = vsub.f32 %v75_v0, %v185_v21  ;;  %v3566_v48 = vsub.f32 %v81_v1, %v189_v26  ;;  %v3568_v49 = vpack.c.bf16 %v195_v29, %v191_v27  ;;  %v3575_v56 = vsub.f32 %v88_v7, %v191_v27 }
  0x13   :  { %5164 = vst [vmem:[#allocation12_spill] sm:$0xff] %v3547_v32  ;;  %5165 = vst [vmem:[#allocation13_spill] sm:$0xff] %v3562_v42  ;;  %2763 = vmatpush1.bf16.msra.mxu1 %v3510_v2  ;;  %2859 = vmatpush1.bf16.msra.mxu0 %v3510_v2  ;;  %v3577_v57 = vsub.f32 %v94_v8, %v195_v29  ;;  %v3579_v58 = vpack.c.bf16 %v197_v35, %v193_v30  ;;  %v199_v60 = vand.u32 4294901760, %v100_v31 }
  0x14   :  { %5166 = vst [vmem:[#allocation14_spill] sm:$0xff] %v3568_v49  ;;  %2765 = vmatprep.subr.bf16.mxu1 %v3525_v10  ;;  %2861 = vmatprep.subr.bf16.mxu0 %v3525_v10  ;;  %v3583_v61 = vsub.f32 %v87_v9, %v193_v30  ;;  %v203_v62 = vand.u32 4294901760, %v106_v39  ;;  %v201_v63 = vand.u32 4294901760, %v99_v40  ;;  %v205_v0 = vand.u32 4294901760, %v105_v41 }
  0x15   :  { %5167 = vst [vmem:[#allocation15_spill] sm:$0xff] %v3579_v58  ;;  %v3585_v1 = vsub.f32 %v93_v14, %v197_v35  ;;  %v253_v6 = vand.u32 4294901760, %v3415_v17  ;;  %v265_v7 = vand.u32 4294901760, %v3417_v18  ;;  %v3589_v8 = vand.u32 4294901760, %v14_v54 }
  0x16   :  { %v3591_v20 = vpack.c.bf16 %v203_v62, %v199_v60  ;;  %v3593_v21 = vsub.f32 %v100_v31, %v199_v60  ;;  %v3595_v26 = vsub.f32 %v106_v39, %v203_v62  ;;  %v3597_v27 = vpack.c.bf16 %v205_v0, %v201_v63 }
  0x17   :  { %5168 = vst [vmem:[#allocation16_spill] sm:$0xff] %v3589_v8  ;;  %2767 = vmatpush1.bf16.msra.mxu1 %v3531_v13  ;;  %2863 = vmatpush1.bf16.msra.mxu0 %v3531_v13  ;;  %v3601_v9 = vsub.f32 %v99_v40, %v201_v63  ;;  %v254_v14 = vsub.f32 %v3415_v17, %v253_v6  ;;  %v259_v30 = vand.u32 4294901760, %v3430_v23  ;;  %v271_v39 = vand.u32 4294901760, %v3432_v24 }
  0x18   :  { %5169 = vst [vmem:[#allocation17_spill] sm:$0xff] %v3591_v20  ;;  %5170 = vst [vmem:[#allocation18_spill] sm:$0xff] %v3597_v27  ;;  %v266_v29 = vsub.f32 %v3417_v18, %v265_v7  ;;  %2769 = vmatprep.subr.bf16.mxu1 %v3547_v32  ;;  %2865 = vmatprep.subr.bf16.mxu0 %v3547_v32  ;;  %v3608_v31 = vsub.f32 %v105_v41, %v205_v0  ;;  %v277_v40 = vand.u32 4294901760, %v3444_v28 }
  0x19   :  { %v3611_v35 = vsub.f32 %v14_v54, %v3589_v8  ;;  %v255_v60 = vand.u32 4294901760, %v254_v14  ;;  %v260_v63 = vsub.f32 %v3430_v23, %v259_v30  ;;  %v289_v3 = vand.u32 4294901760, %v3449_v36 }
  0x1a   :  { %v267_v62 = vand.u32 4294901760, %v266_v29  ;;  %v2876_v13 = vpack.c.bf16 %v265_v7, %v253_v6  ;;  %v272_v41 = vsub.f32 %v3432_v24, %v271_v39  ;;  %v278_v0 = vsub.f32 %v3444_v28, %v277_v40 }
  0x1b   :  { %5171 = vst [vmem:[#allocation19_spill] sm:$0xff] %v3611_v35  ;;  %v3618_v10 = vand.u32 4294901760, %v3611_v35  ;;  %2771 = vmatpush1.bf16.msra.mxu1 %v3562_v42  ;;  %2867 = vmatpush1.bf16.msra.mxu0 %v3562_v42  ;;  %v261_v32 = vand.u32 4294901760, %v260_v63  ;;  %v2878_v14 = vpack.c.bf16 %v271_v39, %v259_v30  ;;  %v290_v29 = vsub.f32 %v3449_v36, %v289_v3 }
  0x1c   :  { %v2780_v54 = vpack.c.bf16 %v267_v62, %v255_v60  ;;  %2773 = vmatprep.subr.bf16.mxu1 %v3568_v49  ;;  %2869 = vmatprep.subr.bf16.mxu0 %v3568_v49  ;;  %v273_v7 = vand.u32 4294901760, %v272_v41  ;;  %v279_v2 = vand.u32 4294901760, %v278_v0  ;;  %v283_v53 = vand.u32 4294901760, %v3454_v38 }
  0x1d   :  { %5172 = vst [vmem:[#allocation20_spill] sm:$0xff] %v3618_v10  ;;  %v243_v6 = vsub.f32 %v3611_v35, %v3618_v10  ;;  %v291_v50 = vand.u32 4294901760, %v290_v29  ;;  %v295_v44 = vand.u32 4294901760, %v3465_v43  ;;  %v301_v60 = vand.u32 4294901760, %v3469_v45 }
  0x1e   :  { %v313_v30 = vand.u32 4294901760, %v3471_v46  ;;  %v2880_v62 = vpack.c.bf16 %v289_v3, %v277_v40  ;;  %v284_v63 = vsub.f32 %v3454_v38, %v283_v53  ;;  %v307_v49 = vand.u32 4294901760, %v3484_v51 }
  0x1f   :  { %v3633_v39 = vand.u32 4294901760, %v243_v6  ;;  %2775 = vmatpush1.bf16.msra.mxu1 %v3579_v58  ;;  %2871 = vmatpush1.bf16.msra.mxu0 %v3579_v58  ;;  %v2782_v41 = vpack.c.bf16 %v273_v7, %v261_v32  ;;  %v2784_v0 = vpack.c.bf16 %v291_v50, %v279_v2  ;;  %v296_v29 = vsub.f32 %v3465_v43, %v295_v44 }
  0x20   :  { %v319_v35 = vand.u32 4294901760, %v3486_v52  ;;  %2777 = vmatprep.subr.bf16.mxu1 %v3591_v20  ;;  %2873 = vmatprep.subr.bf16.mxu0 %v3591_v20  ;;  %v285_v6 = vand.u32 4294901760, %v284_v63  ;;  %v2882_v3 = vpack.c.bf16 %v295_v44, %v283_v53  ;;  %v302_v40 = vsub.f32 %v3469_v45, %v301_v60 }
  0x21   :  { %5173 = vst [vmem:[#allocation21_spill] sm:$0xff] %v3633_v39  ;;  %v314_v42 = vsub.f32 %v3471_v46, %v313_v30  ;;  %v297_v37 = vand.u32 4294901760, %v296_v29  ;;  %v2884_v25 = vpack.c.bf16 %v313_v30, %v301_v60  ;;  %v308_v58 = vsub.f32 %v3484_v51, %v307_v49 }
  0x22   :  { %v320_v50 = vsub.f32 %v3486_v52, %v319_v35  ;;  %v303_v2 = vand.u32 4294901760, %v302_v40  ;;  %v325_v7 = vand.u32 4294901760, %v3495_v55  ;;  %v337_v22 = vand.u32 4294901760, %v3499_v59 }
  0x23   :  { %v315_v32 = vand.u32 4294901760, %v314_v42  ;;  %2779 = vmatpush1.bf16.msra.mxu1 %v3597_v27  ;;  %2875 = vmatpush1.bf16.msra.mxu0 %v3597_v27  ;;  %v309_v44 = vand.u32 4294901760, %v308_v58  ;;  %v2886_v63 = vpack.c.bf16 %v319_v35, %v307_v49  ;;  %v331_v29 = vand.u32 4294901760, %v3512_v4 }
  0x24   :  { %v321_v53 = vand.u32 4294901760, %v320_v50  ;;  %2781 = vmatprep.subr.bf16.mxu1 %v2780_v54  ;;  %2877 = vmatprep.subr.bf16.mxu0 %v2876_v13  ;;  %v2786_v60 = vpack.c.bf16 %v297_v37, %v285_v6  ;;  %v326_v30 = vsub.f32 %v3495_v55, %v325_v7  ;;  %v338_v42 = vsub.f32 %v3499_v59, %v337_v22 }
  0x25   :  { %v343_v40 = vand.u32 4294901760, %v3514_v5  ;;  %v2788_v20 = vpack.c.bf16 %v315_v32, %v303_v2  ;;  %v332_v16 = vsub.f32 %v3512_v4, %v331_v29  ;;  %v349_v27 = vand.u32 4294901760, %v3527_v11 }
  0x26   :  { %v2790_v8 = vpack.c.bf16 %v321_v53, %v309_v44  ;;  %245 = vmatmul.mubr.f32.vlgmr.msra.gmra.mrb[0].mxu1 %v3633_v39  ;;  %720 = vmatmul.mubr.f32.vlgmr.msra.gmra.mrb[0].mxu0 %v3618_v10  ;;  %v327_v49 = vand.u32 4294901760, %v326_v30  ;;  %v339_v58 = vand.u32 4294901760, %v338_v42  ;;  %v2888_v13 = vpack.c.bf16 %v337_v22, %v325_v7 }
  0x27   :  { %v344_v37 = vsub.f32 %v3514_v5, %v343_v40  ;;  %2783 = vmatpush1.bf16.msra.mxu1 %v2782_v41  ;;  %2879 = vmatpush1.bf16.msra.mxu0 %v2878_v14  ;;  %v333_v35 = vand.u32 4294901760, %v332_v16  ;;  %v350_v54 = vsub.f32 %v3527_v11, %v349_v27  ;;  %v361_v6 = vand.u32 4294901760, %v3529_v12 }
  0x28   :  { %v355_v50 = vand.u32 4294901760, %v3538_v15  ;;  %2785 = vmatprep.subr.bf16.mxu1 %v2784_v0  ;;  %2881 = vmatprep.subr.bf16.mxu0 %v2880_v62  ;;  %v2890_v32 = vpack.c.bf16 %v343_v40, %v331_v29  ;;  %v367_v44 = vand.u32 4294901760, %v3540_v19  ;;  %v373_v53 = vand.u32 4294901760, %v3549_v33 }
  0x29   :  { %v345_v2 = vand.u32 4294901760, %v344_v37  ;;  %v2792_v22 = vpack.c.bf16 %v339_v58, %v327_v49  ;;  %v351_v7 = vand.u32 4294901760, %v350_v54  ;;  %v362_v41 = vsub.f32 %v3529_v12, %v361_v6 }
  0x2a   :  { %v356_v16 = vsub.f32 %v3538_v15, %v355_v50  ;;  %v5174_v14 = vmov 0.0   ;;  %v2892_v42 = vpack.c.bf16 %v361_v6, %v349_v27  ;;  %v368_v62 = vsub.f32 %v3540_v19, %v367_v44 }
  0x2b   :  { %475 = vmatprep.mubr.f32.mxu1 %v5174_v14  ;;  %886 = vmatprep.mubr.f32.mxu0 %v5174_v14  ;;  %v2794_v30 = vpack.c.bf16 %v345_v2, %v333_v35  ;;  %v374_v0 = vsub.f32 %v3549_v33, %v373_v53  ;;  %v363_v29 = vand.u32 4294901760, %v362_v41  ;;  %v385_v49 = vand.u32 4294901760, %v3551_v34 }
  0x2c   :  { %2787 = vmatpush1.bf16.msra.mxu1 %v2786_v60  ;;  %2883 = vmatpush1.bf16.msra.mxu0 %v2882_v3  ;;  %v357_v40 = vand.u32 4294901760, %v356_v16  ;;  %v379_v58 = vand.u32 4294901760, %v3564_v47  ;;  %v369_v37 = vand.u32 4294901760, %v368_v62  ;;  %v2894_v54 = vpack.c.bf16 %v367_v44, %v355_v50 }
  0x2d   :  { %2789 = vmatprep.subr.bf16.mxu1 %v2788_v20  ;;  %2885 = vmatprep.subr.bf16.mxu0 %v2884_v25  ;;  %v391_v10 = vand.u32 4294901760, %v3566_v48  ;;  %v397_v27 = vand.u32 4294901760, %v3575_v56  ;;  %v2796_v35 = vpack.c.bf16 %v363_v29, %v351_v7  ;;  %v375_v6 = vand.u32 4294901760, %v374_v0 }
  0x2e   :  { %v386_v2 = vsub.f32 %v3551_v34, %v385_v49  ;;  %v380_v3 = vsub.f32 %v3564_v47, %v379_v58  ;;  %v2798_v60 = vpack.c.bf16 %v369_v37, %v357_v40  ;;  %v2896_v41 = vpack.c.bf16 %v385_v49, %v373_v53 }
  0x2f   :  { %v392_v16 = vsub.f32 %v3566_v48, %v391_v10  ;;  %v398_v39 = vsub.f32 %v3575_v56, %v397_v27  ;;  %v409_v50 = vand.u32 4294901760, %v3577_v57  ;;  %v403_v44 = vand.u32 4294901760, %v3583_v61 }
  0x30   :  { %2791 = vmatpush1.bf16.msra.mxu1 %v2790_v8  ;;  %2887 = vmatpush1.bf16.msra.mxu0 %v2886_v63  ;;  %v387_v25 = vand.u32 4294901760, %v386_v2  ;;  %v381_v20 = vand.u32 4294901760, %v380_v3  ;;  %v2898_v62 = vpack.c.bf16 %v391_v10, %v379_v58  ;;  %v415_v0 = vand.u32 4294901760, %v3585_v1 }
  0x31   :  { %2793 = vmatprep.subr.bf16.mxu1 %v2792_v22  ;;  %2889 = vmatprep.subr.bf16.mxu0 %v2888_v13  ;;  %v393_v7 = vand.u32 4294901760, %v392_v16  ;;  %v421_v53 = vand.u32 4294901760, %v3593_v21  ;;  %v399_v40 = vand.u32 4294901760, %v398_v39  ;;  %v410_v49 = vsub.f32 %v3577_v57, %v409_v50 }
  0x32   :  { %v2800_v29 = vpack.c.bf16 %v387_v25, %v375_v6  ;;  %v404_v8 = vsub.f32 %v3583_v61, %v403_v44  ;;  %v2900_v37 = vpack.c.bf16 %v409_v50, %v397_v27  ;;  %v416_v2 = vsub.f32 %v3585_v1, %v415_v0 }
  0x33   :  { %v2802_v63 = vpack.c.bf16 %v393_v7, %v381_v20  ;;  %v422_v3 = vsub.f32 %v3593_v21, %v421_v53  ;;  %v411_v13 = vand.u32 4294901760, %v410_v49  ;;  %v433_v22 = vand.u32 4294901760, %v3595_v26 }
  0x34   :  { %2795 = vmatpush1.bf16.msra.mxu1 %v2794_v30  ;;  %2891 = vmatpush1.bf16.msra.mxu0 %v2890_v32  ;;  %v405_v10 = vand.u32 4294901760, %v404_v8  ;;  %v427_v58 = vand.u32 4294901760, %v3601_v9  ;;  %v417_v39 = vand.u32 4294901760, %v416_v2  ;;  %v3689_v6 = vpack.c.bf16 %v415_v0, %v403_v44 }
  0x35   :  { %2797 = vmatprep.subr.bf16.mxu1 %v2796_v35  ;;  %2893 = vmatprep.subr.bf16.mxu0 %v2892_v42  ;;  %v423_v16 = vand.u32 4294901760, %v422_v3  ;;  %v439_v27 = vand.u32 4294901760, %v3608_v31  ;;  %v2804_v25 = vpack.c.bf16 %v411_v13, %v399_v40  ;;  %v434_v20 = vsub.f32 %v3595_v26, %v433_v22  ;;  %v24_v3 = vld [vmem:[%s4912_s0 + $0x48] sm:$0xff] }
  0x36   :  { %v428_v30 = vsub.f32 %v3601_v9, %v427_v58  ;;  %v2806_v50 = vpack.c.bf16 %v417_v39, %v405_v10  ;;  %v3696_v7 = vpack.c.bf16 %v433_v22, %v421_v53  ;;  %v20_v22 = vld [vmem:[%s4912_s0 + $0x28] sm:$0xff]  ;;  %v17_v39 = vld [vmem:[%s4912_s0 + $0x10] sm:$0xff]  ;;  %v1002_v10 = vand.u32 4294901760, %v24_v3 }
  0x37   :  { %v440_v35 = vsub.f32 %v3608_v31, %v439_v27  ;;  %v3699_v42 = vpack.c.bf16 %v439_v27, %v427_v58  ;;  %v435_v44 = vand.u32 4294901760, %v434_v20  ;;  %v26_v58 = vld [vmem:[%s4912_s0 + $0x58] sm:$0xff]  ;;  %v1853_v13 = vand.u32 4294901760, %v20_v22  ;;  %v36_v20 = vld [vmem:[%s4912_s0 + $0xa8] sm:$0xff] }
  0x38   :  { %2799 = vmatpush1.bf16.msra.mxu1 %v2798_v60  ;;  %2895 = vmatpush1.bf16.msra.mxu0 %v2894_v54  ;;  %v429_v0 = vand.u32 4294901760, %v428_v30  ;;  %v18_v60 = vld [vmem:[%s4912_s0 + $0x18] sm:$0xff]  ;;  %v1000_v54 = vand.u32 4294901760, %v17_v39  ;;  %v3765_v53 = vsub.f32 %v24_v3, %v1002_v10  ;;  %v32_v40 = vld [vmem:[%s4912_s0 + $0x88] sm:$0xff] }
  0x39   :  { %2801 = vmatprep.subr.bf16.mxu1 %v2800_v29  ;;  %2897 = vmatprep.subr.bf16.mxu0 %v2896_v41  ;;  %v441_v8 = vand.u32 4294901760, %v440_v35  ;;  %v2808_v29 = vpack.c.bf16 %v435_v44, %v423_v16  ;;  %v23_v35 = vld [vmem:[%s4912_s0 + $0x40] sm:$0xff]  ;;  %v998_v27 = vand.u32 4294901760, %v18_v60  ;;  %v1857_v41 = vand.u32 4294901760, %v26_v58 }
  0x3a   :  { %v19_v44 = vld [vmem:[%s4912_s0 + $0x20] sm:$0xff]  ;;  %5177 = vst [vmem:[#allocation24_spill] sm:$0xff] %v3765_v53  ;;  %v3776_v32 = vsub.f32 %v20_v22, %v1853_v13 }
  0x3b   :  { %v2810_v16 = vpack.c.bf16 %v441_v8, %v429_v0  ;;  %v25_v0 = vld [vmem:[%s4912_s0 + $0x50] sm:$0xff]  ;;  %v1004_v8 = vand.u32 4294901760, %v23_v35  ;;  %v1855_v2 = vand.u32 4294901760, %v19_v44  ;;  %v3767_v49 = vpack.c.bf16 %v1857_v41, %v1853_v13  ;;  %v31_v22 = vld [vmem:[%s4912_s0 + $0x80] sm:$0xff] }
  0x3c   :  { %2803 = vmatpush1.bf16.msra.mxu1 %v2802_v63  ;;  %2899 = vmatpush1.bf16.msra.mxu0 %v2898_v62  ;;  %v30_v62 = vld [vmem:[%s4912_s0 + $0x78] sm:$0xff]  ;;  %v1859_v30 = vand.u32 4294901760, %v25_v0  ;;  %5179 = vst [vmem:[#allocation26_spill] sm:$0xff] %v3776_v32  ;;  %v1010_v13 = vand.u32 4294901760, %v36_v20 }
  0x3d   :  { %2805 = vmatprep.subr.bf16.mxu1 %v2804_v25  ;;  %2901 = vmatprep.subr.bf16.mxu0 %v2900_v37  ;;  %v3761_v25 = vpack.c.bf16 %v1002_v10, %v998_v27  ;;  %v3763_v37 = vsub.f32 %v18_v60, %v998_v27  ;;  %5178 = vst [vmem:[#allocation25_spill] sm:$0xff] %v3767_v49  ;;  %v38_v63 = vld [vmem:[%s4912_s0 + $0xb8] sm:$0xff]  ;;  %v1006_v3 = vand.u32 4294901760, %v30_v62  ;;  %v29_v10 = vld [vmem:[%s4912_s0 + $0x70] sm:$0xff]  ;;  %v35_v27 = vld [vmem:[%s4912_s0 + $0xa0] sm:$0xff] }
  0x3e   :  { %v3780_v60 = vpack.c.bf16 %v1004_v8, %v1000_v54  ;;  %v1865_v32 = vand.u32 4294901760, %v38_v63 }
  0x3f   :  { %5175 = vst [vmem:[#allocation22_spill] sm:$0xff] %v3761_v25  ;;  %5176 = vst [vmem:[#allocation23_spill] sm:$0xff] %v3763_v37  ;;  %v3778_v25 = vsub.f32 %v26_v58, %v1857_v41  ;;  %v3793_v41 = vpack.c.bf16 %v1859_v30, %v1855_v2  ;;  %v3798_v58 = vsub.f32 %v19_v44, %v1855_v2  ;;  %v48_v2 = vld [vmem:[%s4912_s0 + $0x108] sm:$0xff] }
  0x40   :  { %2807 = vmatpush1.bf16.msra.mxu1 %v2806_v50  ;;  %2903 = vmatpush1.bf16.msra.mxu0 %v3689_v6  ;;  %5181 = vst [vmem:[#allocation28_spill] sm:$0xff] %v3780_v60  ;;  %v3789_v50 = vsub.f32 %v17_v39, %v1000_v54  ;;  %v3791_v6 = vsub.f32 %v23_v35, %v1004_v8  ;;  %v1008_v39 = vand.u32 4294901760, %v29_v10  ;;  %v1012_v35 = vand.u32 4294901760, %v35_v27  ;;  %v42_v8 = vld [vmem:[%s4912_s0 + $0xd8] sm:$0xff] }
  0x41   :  { %5180 = vst [vmem:[#allocation27_spill] sm:$0xff] %v3778_v25  ;;  %2809 = vmatprep.subr.bf16.mxu1 %v2808_v29  ;;  %2905 = vmatprep.subr.bf16.mxu0 %v3696_v7  ;;  %5183 = vst [vmem:[#allocation30_spill] sm:$0xff] %v3793_v41  ;;  %v3800_v60 = vsub.f32 %v25_v0, %v1859_v30  ;;  %v1861_v25 = vand.u32 4294901760, %v32_v40  ;;  %v37_v7 = vld [vmem:[%s4912_s0 + $0xb0] sm:$0xff]  ;;  %v3805_v54 = vpack.c.bf16 %v1010_v13, %v1006_v3  ;;  %v44_v30 = vld [vmem:[%s4912_s0 + $0xe8] sm:$0xff] }
  0x42   :  { %5182 = vst [vmem:[#allocation29_spill] sm:$0xff] %v3789_v50  ;;  %v3807_v29 = vsub.f32 %v30_v62, %v1006_v3  ;;  %v3819_v44 = vsub.f32 %v36_v20, %v1010_v13  ;;  %v1863_v3 = vand.u32 4294901760, %v31_v22  ;;  %v3835_v20 = vsub.f32 %v38_v63, %v1865_v32 }
  0x43   :  { %5184 = vst [vmem:[#allocation31_spill] sm:$0xff] %v3800_v60  ;;  %5185 = vst [vmem:[#allocation32_spill] sm:$0xff] %v3805_v54  ;;  %v3821_v0 = vpack.c.bf16 %v1865_v32, %v1861_v25  ;;  %v3823_v62 = vsub.f32 %v32_v40, %v1861_v25  ;;  %v41_v54 = vld [vmem:[%s4912_s0 + $0xd0] sm:$0xff]  ;;  %v3837_v13 = vpack.c.bf16 %v1012_v35, %v1008_v39  ;;  %v1867_v25 = vand.u32 4294901760, %v37_v7 }
  0x44   :  { %5186 = vst [vmem:[#allocation33_spill] sm:$0xff] %v3807_v29  ;;  %2811 = vmatpush1.bf16.msra.mxu1 %v2810_v16  ;;  %2907 = vmatpush1.bf16.msra.mxu0 %v3699_v42  ;;  %5187 = vst [vmem:[#allocation34_spill] sm:$0xff] %v3819_v44  ;;  %v50_v29 = vld [vmem:[%s4912_s0 + $0x118] sm:$0xff]  ;;  %v5190_v16 = vpack.c.bf16 %v3417_v18, %v3415_v17  ;;  %v5191_v42 = vld [vmem:[#allocation2_spill] sm:$0xff]  ;;  %v3839_v40 = vsub.f32 %v29_v10, %v1008_v39  ;;  %v1018_v41 = vand.u32 4294901760, %v48_v2 }
  0x45   :  { %5188 = vst [vmem:[#allocation35_spill] sm:$0xff] %v3821_v0  ;;  %5189 = vst [vmem:[#allocation36_spill] sm:$0xff] %v3823_v62  ;;  %2909 = vmatprep.subr.bf16.mxu0 %v5191_v42  ;;  %v47_v62 = vld [vmem:[%s4912_s0 + $0x100] sm:$0xff]  ;;  %v3844_v44 = vsub.f32 %v35_v27, %v1012_v35  ;;  %v1014_v0 = vand.u32 4294901760, %v42_v8  ;;  %v1869_v60 = vand.u32 4294901760, %v44_v30  ;;  %v5195_v18 = vld [vmem:[#allocation16_spill] sm:$0xff]  ;;  %v3851_v32 = vpack.c.bf16 %v1867_v25, %v1863_v3 }
  0x46   :  { %2813 = vmatprep.subr.bf16.mxu1 %v5190_v16  ;;  %5192 = vst [vmem:[#allocation2_spill] sm:$0xff] %v3837_v13  ;;  %5193 = vst [vmem:[#allocation37_spill] sm:$0xff] %v3839_v40  ;;  %v43_v17 = vld [vmem:[%s4912_s0 + $0xe0] sm:$0xff]  ;;  %v3853_v63 = vsub.f32 %v31_v22, %v1863_v3  ;;  %v1873_v10 = vand.u32 4294901760, %v50_v29  ;;  %v1016_v39 = vand.u32 4294901760, %v41_v54  ;;  %v49_v27 = vld [vmem:[%s4912_s0 + $0x110] sm:$0xff]  ;;  %v5198_v35 = vpack.c.bf16 %v3432_v24, %v3430_v23 }
  0x47   :  { %5194 = vst [vmem:[#allocation38_spill] sm:$0xff] %v3844_v44  ;;  %477 = vmatmul.mubr.f32.vlgmr.msra.gmra.mrb[0].mxu1 %v5195_v18  ;;  %888 = vmatmul.mubr.f32.vlgmr.msra.gmra.mrb[0].mxu0 %v5195_v18  ;;  %5196 = vst [vmem:[#allocation39_spill] sm:$0xff] %v3851_v32  ;;  %v5199_v16 = vld [vmem:[#allocation3_spill] sm:$0xff]  ;;  %v3862_v42 = vsub.f32 %v37_v7, %v1867_v25  ;;  %v3864_v44 = vpack.c.bf16 %v1018_v41, %v1014_v0  ;;  %v1020_v22 = vand.u32 4294901760, %v47_v62  ;;  %v54_v3 = vld [vmem:[%s4912_s0 + $0x138] sm:$0xff] }
  0x48   :  { %5197 = vst [vmem:[#allocation40_spill] sm:$0xff] %v3853_v63  ;;  %2815 = vmatpush1.bf16.msra.mxu1 %v5198_v35  ;;  %2911 = vmatpush1.bf16.msra.mxu0 %v5199_v16  ;;  %v3866_v40 = vsub.f32 %v42_v8, %v1014_v0  ;;  %v60_v63 = vld [vmem:[%s4912_s0 + $0x168] sm:$0xff]  ;;  %v5203_v24 = vpack.c.bf16 %v3449_v36, %v3444_v28  ;;  %v5204_v7 = vld [vmem:[#allocation4_spill] sm:$0xff]  ;;  %v1871_v35 = vand.u32 4294901760, %v43_v17  ;;  %v62_v16 = vld [vmem:[%s4912_s0 + $0x178] sm:$0xff] }
  0x49   :  { %5200 = vst [vmem:[#allocation3_spill] sm:$0xff] %v3862_v42  ;;  %5201 = vst [vmem:[#allocation41_spill] sm:$0xff] %v3864_v44  ;;  %v56_v23 = vld [vmem:[%s4912_s0 + $0x148] sm:$0xff]  ;;  %2913 = vmatprep.subr.bf16.mxu0 %v5204_v7  ;;  %v3881_v8 = vsub.f32 %v48_v2, %v1018_v41  ;;  %v3883_v0 = vpack.c.bf16 %v1873_v10, %v1869_v60  ;;  %v3885_v25 = vsub.f32 %v44_v30, %v1869_v60  ;;  %v59_v2 = vld [vmem:[%s4912_s0 + $0x160] sm:$0xff] }
  0x4a   :  { %5202 = vst [vmem:[#allocation42_spill] sm:$0xff] %v3866_v40  ;;  %2817 = vmatprep.subr.bf16.mxu1 %v5203_v24  ;;  %v53_v40 = vld [vmem:[%s4912_s0 + $0x130] sm:$0xff]  ;;  %611 = vmatprep.mubr.f32.mxu1 %v5174_v14  ;;  %v3895_v28 = vsub.f32 %v50_v29, %v1873_v10  ;;  %v3897_v36 = vpack.c.bf16 %v1020_v22, %v1016_v39  ;;  %v1875_v60 = vand.u32 4294901760, %v49_v27  ;;  %v1022_v24 = vand.u32 4294901760, %v54_v3  ;;  %v5213_v29 = vld [vmem:[#allocation5_spill] sm:$0xff] }
  0x4b   :  { %5205 = vst [vmem:[#allocation4_spill] sm:$0xff] %v3881_v8  ;;  %5206 = vst [vmem:[#allocation43_spill] sm:$0xff] %v3883_v0  ;;  %990 = vmatprep.mubr.f32.mxu0 %v5174_v14  ;;  %v3899_v41 = vsub.f32 %v41_v54, %v1016_v39  ;;  %v3904_v30 = vsub.f32 %v47_v62, %v1020_v22  ;;  %v1026_v7 = vand.u32 4294901760, %v60_v63  ;;  %v1881_v39 = vand.u32 4294901760, %v62_v16  ;;  %v55_v62 = vld [vmem:[%s4912_s0 + $0x140] sm:$0xff]  ;;  %v61_v22 = vld [vmem:[%s4912_s0 + $0x170] sm:$0xff] }
  0x4c   :  { %5207 = vst [vmem:[#allocation44_spill] sm:$0xff] %v3885_v25  ;;  %5208 = vst [vmem:[#allocation45_spill] sm:$0xff] %v3895_v28  ;;  %v1877_v25 = vand.u32 4294901760, %v56_v23  ;;  %v5212_v8 = vpack.c.bf16 %v3465_v43, %v3454_v38  ;;  %2915 = vmatpush1.bf16.msra.mxu0 %v5213_v29  ;;  %v3910_v10 = vpack.c.bf16 %v1875_v60, %v1871_v35  ;;  %v66_v38 = vld [vmem:[%s4912_s0 + $0x198] sm:$0xff]  ;;  %v68_v28 = vld [vmem:[%s4912_s0 + $0x1a8] sm:$0xff] }
  0x4d   :  { %5209 = vst [vmem:[#allocation46_spill] sm:$0xff] %v3897_v36  ;;  %5210 = vst [vmem:[#allocation47_spill] sm:$0xff] %v3899_v41  ;;  %v3912_v54 = vsub.f32 %v43_v17, %v1871_v35  ;;  %v1024_v41 = vand.u32 4294901760, %v53_v40  ;;  %v5216_v43 = vpack.c.bf16 %v3471_v46, %v3469_v45  ;;  %v5217_v17 = vld [vmem:[#allocation6_spill] sm:$0xff]  ;;  %v3929_v35 = vpack.c.bf16 %v1026_v7, %v1022_v24  ;;  %v74_v45 = vld [vmem:[%s4912_s0 + $0x1d8] sm:$0xff] }
  0x4e   :  { %5211 = vst [vmem:[#allocation48_spill] sm:$0xff] %v3904_v30  ;;  %2819 = vmatpush1.bf16.msra.mxu1 %v5212_v8  ;;  %5214 = vst [vmem:[#allocation5_spill] sm:$0xff] %v3910_v10  ;;  %2917 = vmatprep.subr.bf16.mxu0 %v5217_v17  ;;  %v3927_v8 = vsub.f32 %v49_v27, %v1875_v60  ;;  %v3931_v29 = vsub.f32 %v54_v3, %v1022_v24  ;;  %v72_v30 = vld [vmem:[%s4912_s0 + $0x1c8] sm:$0xff]  ;;  %v1879_v17 = vand.u32 4294901760, %v55_v62 }
  0x4f   :  { %5215 = vst [vmem:[#allocation49_spill] sm:$0xff] %v3912_v54  ;;  %2821 = vmatprep.subr.bf16.mxu1 %v5216_v43  ;;  %5219 = vst [vmem:[#allocation50_spill] sm:$0xff] %v3929_v35  ;;  %v1028_v54 = vand.u32 4294901760, %v59_v2  ;;  %v3942_v46 = vsub.f32 %v60_v63, %v1026_v7  ;;  %v3944_v27 = vpack.c.bf16 %v1881_v39, %v1877_v25  ;;  %v5228_v7 = vld [vmem:[#allocation7_spill] sm:$0xff] }
  0x50   :  { %5218 = vst [vmem:[#allocation6_spill] sm:$0xff] %v3927_v8  ;;  %5220 = vst [vmem:[#allocation51_spill] sm:$0xff] %v3931_v29  ;;  %v3946_v60 = vsub.f32 %v56_v23, %v1877_v25  ;;  %v3948_v3 = vsub.f32 %v62_v16, %v1881_v39  ;;  %v3952_v43 = vsub.f32 %v53_v40, %v1024_v41  ;;  %v1883_v29 = vand.u32 4294901760, %v61_v22  ;;  %v65_v8 = vld [vmem:[%s4912_s0 + $0x190] sm:$0xff]  ;;  %v71_v40 = vld [vmem:[%s4912_s0 + $0x1c0] sm:$0xff] }
  0x51   :  { %5221 = vst [vmem:[#allocation52_spill] sm:$0xff] %v3942_v46  ;;  %5222 = vst [vmem:[#allocation53_spill] sm:$0xff] %v3944_v27  ;;  %v3950_v24 = vpack.c.bf16 %v1028_v54, %v1024_v41  ;;  %v5227_v63 = vpack.c.bf16 %v3486_v52, %v3484_v51  ;;  %2919 = vmatpush1.bf16.msra.mxu0 %v5228_v7  ;;  %v1030_v23 = vand.u32 4294901760, %v66_v38  ;;  %v1034_v25 = vand.u32 4294901760, %v72_v30  ;;  %v67_v41 = vld [vmem:[%s4912_s0 + $0x1a0] sm:$0xff]  ;;  %v5230_v51 = vld [vmem:[#allocation8_spill] sm:$0xff] }
  0x52   :  { %5223 = vst [vmem:[#allocation54_spill] sm:$0xff] %v3946_v60  ;;  %5224 = vst [vmem:[#allocation55_spill] sm:$0xff] %v3948_v3  ;;  %v1885_v16 = vand.u32 4294901760, %v68_v28  ;;  %v1889_v39 = vand.u32 4294901760, %v74_v45  ;;  %2921 = vmatprep.subr.bf16.mxu0 %v5230_v51  ;;  %v3971_v52 = vsub.f32 %v59_v2, %v1028_v54  ;;  %v3975_v7 = vsub.f32 %v55_v62, %v1879_v17  ;;  %v73_v3 = vld [vmem:[%s4912_s0 + $0x1d0] sm:$0xff]  ;;  %v78_v60 = vld [vmem:[%s4912_s0 + $0x1f8] sm:$0xff] }
  0x53   :  { %5225 = vst [vmem:[#allocation56_spill] sm:$0xff] %v3950_v24  ;;  %5226 = vst [vmem:[#allocation57_spill] sm:$0xff] %v3952_v43  ;;  %2823 = vmatpush1.bf16.msra.mxu1 %v5227_v63  ;;  %v5229_v43 = vpack.c.bf16 %v3499_v59, %v3495_v55  ;;  %v3973_v63 = vpack.c.bf16 %v1883_v29, %v1879_v17  ;;  %v84_v55 = vld [vmem:[%s4912_s0 + $0x228] sm:$0xff]  ;;  %v3986_v59 = vsub.f32 %v61_v22, %v1883_v29  ;;  %v86_v17 = vld [vmem:[%s4912_s0 + $0x238] sm:$0xff] }
  0x54   :  { %5231 = vst [vmem:[#allocation7_spill] sm:$0xff] %v3971_v52  ;;  %5233 = vst [vmem:[#allocation58_spill] sm:$0xff] %v3975_v7  ;;  %v3988_v2 = vpack.c.bf16 %v1034_v25, %v1030_v23  ;;  %v3990_v54 = vsub.f32 %v66_v38, %v1030_v23  ;;  %v1032_v62 = vand.u32 4294901760, %v65_v8  ;;  %v3998_v51 = vsub.f32 %v72_v30, %v1034_v25  ;;  %v5240_v29 = vld [vmem:[#allocation9_spill] sm:$0xff]  ;;  %v5242_v30 = vld [vmem:[#allocation10_spill] sm:$0xff] }
  0x55   :  { %2825 = vmatprep.subr.bf16.mxu1 %v5229_v43  ;;  %5232 = vst [vmem:[#allocation8_spill] sm:$0xff] %v3973_v63  ;;  %5234 = vst [vmem:[#allocation59_spill] sm:$0xff] %v3986_v59  ;;  %v80_v43 = vld [vmem:[%s4912_s0 + $0x208] sm:$0xff]  ;;  %v4000_v7 = vpack.c.bf16 %v1889_v39, %v1885_v16  ;;  %v4002_v52 = vsub.f32 %v68_v28, %v1885_v16  ;;  %v1036_v22 = vand.u32 4294901760, %v71_v40  ;;  %2923 = vmatpush1.bf16.msra.mxu0 %v5240_v29 }
  0x56   :  { %5235 = vst [vmem:[#allocation60_spill] sm:$0xff] %v3988_v2  ;;  %5236 = vst [vmem:[#allocation61_spill] sm:$0xff] %v3990_v54  ;;  %v5239_v38 = vpack.c.bf16 %v3514_v5, %v3512_v4  ;;  %v1887_v23 = vand.u32 4294901760, %v67_v41  ;;  %v1891_v54 = vand.u32 4294901760, %v73_v3  ;;  %v1038_v59 = vand.u32 4294901760, %v78_v60  ;;  %2925 = vmatprep.subr.bf16.mxu0 %v5242_v30  ;;  %v77_v4 = vld [vmem:[%s4912_s0 + $0x1f0] sm:$0xff] }
  0x57   :  { %5237 = vst [vmem:[#allocation62_spill] sm:$0xff] %v4000_v7  ;;  %5238 = vst [vmem:[#allocation63_spill] sm:$0xff] %v4002_v52  ;;  %v1042_v46 = vand.u32 4294901760, %v84_v55  ;;  %v5241_v2 = vpack.c.bf16 %v3529_v12, %v3527_v11  ;;  %v4012_v25 = vsub.f32 %v74_v45, %v1889_v39  ;;  %v4014_v28 = vsub.f32 %v65_v8, %v1032_v62  ;;  %v83_v5 = vld [vmem:[%s4912_s0 + $0x220] sm:$0xff]  ;;  %v96_v29 = vld [vmem:[%s4912_s0 + $0x288] sm:$0xff] }
  0x58   :  { %2827 = vmatpush1.bf16.msra.mxu1 %v5239_v38  ;;  %v1893_v16 = vand.u32 4294901760, %v80_v43  ;;  %v1897_v52 = vand.u32 4294901760, %v86_v17  ;;  %v79_v11 = vld [vmem:[%s4912_s0 + $0x200] sm:$0xff]  ;;  %v4025_v12 = vpack.c.bf16 %v1036_v22, %v1032_v62  ;;  %v4027_v45 = vsub.f32 %v71_v40, %v1036_v22  ;;  %v90_v38 = vld [vmem:[%s4912_s0 + $0x258] sm:$0xff] }
  0x59   :  { %2829 = vmatprep.subr.bf16.mxu1 %v5241_v2  ;;  %5243 = vst [vmem:[#allocation9_spill] sm:$0xff] %v4014_v28  ;;  %v4029_v8 = vpack.c.bf16 %v1891_v54, %v1887_v23  ;;  %v4031_v39 = vsub.f32 %v67_v41, %v1887_v23  ;;  %v85_v2 = vld [vmem:[%s4912_s0 + $0x230] sm:$0xff]  ;;  %v4042_v62 = vsub.f32 %v73_v3, %v1891_v54  ;;  %v92_v23 = vld [vmem:[%s4912_s0 + $0x268] sm:$0xff]  ;;  %v1040_v3 = vand.u32 4294901760, %v77_v4 }
  0x5a   :  { %5244 = vst [vmem:[#allocation10_spill] sm:$0xff] %v4025_v12  ;;  %5245 = vst [vmem:[#allocation64_spill] sm:$0xff] %v4027_v45  ;;  %v4044_v40 = vpack.c.bf16 %v1042_v46, %v1038_v59  ;;  %v4046_v22 = vsub.f32 %v78_v60, %v1038_v59  ;;  %v4048_v41 = vsub.f32 %v84_v55, %v1042_v46  ;;  %v1044_v54 = vand.u32 4294901760, %v83_v5  ;;  %v5256_v46 = vld [vmem:[#allocation12_spill] sm:$0xff] }
  0x5b   :  { %5246 = vst [vmem:[#allocation65_spill] sm:$0xff] %v4029_v8  ;;  %5247 = vst [vmem:[#allocation66_spill] sm:$0xff] %v4031_v39  ;;  %v5252_v30 = vpack.c.bf16 %v3540_v19, %v3538_v15  ;;  %v5253_v39 = vld [vmem:[#allocation11_spill] sm:$0xff]  ;;  %v4057_v45 = vpack.c.bf16 %v1897_v52, %v1893_v16  ;;  %v5255_v60 = vpack.c.bf16 %v3551_v34, %v3549_v33  ;;  %v1899_v59 = vand.u32 4294901760, %v85_v2  ;;  %v98_v15 = vld [vmem:[%s4912_s0 + $0x298] sm:$0xff] }
  0x5c   :  { %5248 = vst [vmem:[#allocation67_spill] sm:$0xff] %v4042_v62  ;;  %5249 = vst [vmem:[#allocation68_spill] sm:$0xff] %v4044_v40  ;;  %2927 = vmatpush1.bf16.msra.mxu0 %v5253_v39  ;;  %v1895_v62 = vand.u32 4294901760, %v79_v11  ;;  %v4063_v55 = vsub.f32 %v80_v43, %v1893_v16  ;;  %v89_v19 = vld [vmem:[%s4912_s0 + $0x250] sm:$0xff]  ;;  %v95_v33 = vld [vmem:[%s4912_s0 + $0x280] sm:$0xff]  ;;  %v4074_v34 = vsub.f32 %v86_v17, %v1897_v52  ;;  %v1901_v16 = vand.u32 4294901760, %v92_v23 }
  0x5d   :  { %5250 = vst [vmem:[#allocation69_spill] sm:$0xff] %v4046_v22  ;;  %5251 = vst [vmem:[#allocation70_spill] sm:$0xff] %v4048_v41  ;;  %2831 = vmatpush1.bf16.msra.mxu1 %v5252_v30  ;;  %2929 = vmatprep.subr.bf16.mxu0 %v5256_v46  ;;  %v1046_v41 = vand.u32 4294901760, %v90_v38  ;;  %v1050_v22 = vand.u32 4294901760, %v96_v29  ;;  %v4076_v39 = vpack.c.bf16 %v1044_v54, %v1040_v3  ;;  %v91_v30 = vld [vmem:[%s4912_s0 + $0x260] sm:$0xff]  ;;  %v102_v46 = vld [vmem:[%s4912_s0 + $0x2b8] sm:$0xff] }
  0x5e   :  { %5254 = vst [vmem:[#allocation11_spill] sm:$0xff] %v4057_v45  ;;  %2833 = vmatprep.subr.bf16.mxu1 %v5255_v60  ;;  %5257 = vst [vmem:[#allocation12_spill] sm:$0xff] %v4063_v55  ;;  %v4078_v43 = vsub.f32 %v77_v4, %v1040_v3  ;;  %v97_v60 = vld [vmem:[%s4912_s0 + $0x290] sm:$0xff]  ;;  %v4089_v55 = vsub.f32 %v83_v5, %v1044_v54  ;;  %v4091_v52 = vpack.c.bf16 %v1899_v59, %v1895_v62  ;;  %v108_v3 = vld [vmem:[%s4912_s0 + $0x2e8] sm:$0xff] }
  0x5f   :  { %5258 = vst [vmem:[#allocation71_spill] sm:$0xff] %v4074_v34  ;;  %5259 = vst [vmem:[#allocation72_spill] sm:$0xff] %v4076_v39  ;;  %v4093_v17 = vsub.f32 %v79_v11, %v1895_v62  ;;  %v4095_v4 = vsub.f32 %v85_v2, %v1899_v59  ;;  %v5266_v34 = vld [vmem:[#allocation13_spill] sm:$0xff]  ;;  %v4104_v28 = vpack.c.bf16 %v1050_v22, %v1046_v41  ;;  %v1905_v54 = vand.u32 4294901760, %v98_v15  ;;  %v5269_v2 = vld [vmem:[#allocation14_spill] sm:$0xff] }
  0x60   :  { %5260 = vst [vmem:[#allocation73_spill] sm:$0xff] %v4078_v43  ;;  %5261 = vst [vmem:[#allocation74_spill] sm:$0xff] %v4089_v55  ;;  %v5265_v43 = vpack.c.bf16 %v3566_v48, %v3564_v47  ;;  %2931 = vmatpush1.bf16.msra.mxu0 %v5266_v34  ;;  %v4106_v5 = vsub.f32 %v90_v38, %v1046_v41  ;;  %v1048_v55 = vand.u32 4294901760, %v89_v19  ;;  %v1052_v62 = vand.u32 4294901760, %v95_v33  ;;  %v104_v47 = vld [vmem:[%s4912_s0 + $0x2c8] sm:$0xff] }
  0x61   :  { %5262 = vst [vmem:[#allocation75_spill] sm:$0xff] %v4091_v52  ;;  %5263 = vst [vmem:[#allocation76_spill] sm:$0xff] %v4093_v17  ;;  %v5268_v11 = vpack.c.bf16 %v3577_v57, %v3575_v56  ;;  %2933 = vmatprep.subr.bf16.mxu0 %v5269_v2  ;;  %v1903_v59 = vand.u32 4294901760, %v91_v30  ;;  %v1054_v17 = vand.u32 4294901760, %v102_v46  ;;  %v4115_v48 = vsub.f32 %v96_v29, %v1050_v22  ;;  %v110_v56 = vld [vmem:[%s4912_s0 + $0x2f8] sm:$0xff]  ;;  %v101_v57 = vld [vmem:[%s4912_s0 + $0x2b0] sm:$0xff] }
  0x62   :  { %5264 = vst [vmem:[#allocation77_spill] sm:$0xff] %v4095_v4  ;;  %2835 = vmatpush1.bf16.msra.mxu1 %v5265_v43  ;;  %5267 = vst [vmem:[#allocation13_spill] sm:$0xff] %v4104_v28  ;;  %v1907_v4 = vand.u32 4294901760, %v97_v60  ;;  %v4117_v38 = vpack.c.bf16 %v1905_v54, %v1901_v16  ;;  %v4119_v41 = vsub.f32 %v92_v23, %v1901_v16  ;;  %v1058_v34 = vand.u32 4294901760, %v108_v3  ;;  %v107_v43 = vld [vmem:[%s4912_s0 + $0x2e0] sm:$0xff]  ;;  %v109_v2 = vld [vmem:[%s4912_s0 + $0x2f0] sm:$0xff] }
  0x63   :  { %2837 = vmatprep.subr.bf16.mxu1 %v5268_v11  ;;  %5270 = vst [vmem:[#allocation14_spill] sm:$0xff] %v4115_v48  ;;  %v4130_v11 = vsub.f32 %v98_v15, %v1905_v54  ;;  %v4132_v29 = vpack.c.bf16 %v1052_v62, %v1048_v55  ;;  %v4134_v22 = vsub.f32 %v89_v19, %v1048_v55  ;;  %v103_v16 = vld [vmem:[%s4912_s0 + $0x2c0] sm:$0xff]  ;;  %v5278_v15 = vld [vmem:[#allocation15_spill] sm:$0xff]  ;;  %v1915_v48 = vand.u32 4294901760, %v109_v2 }
  0x64   :  { %5271 = vst [vmem:[#allocation78_spill] sm:$0xff] %v4117_v38  ;;  %5272 = vst [vmem:[#allocation79_spill] sm:$0xff] %v4119_v41  ;;  %v4136_v23 = vsub.f32 %v95_v33, %v1052_v62  ;;  %v5277_v41 = vpack.c.bf16 %v3585_v1, %v3583_v61  ;;  %2935 = vmatpush1.bf16.msra.mxu0 %v5278_v15  ;;  %v4148_v54 = vpack.c.bf16 %v1907_v4, %v1903_v59 }
  0x65   :  { %5273 = vst [vmem:[#allocation80_spill] sm:$0xff] %v4130_v11  ;;  %5274 = vst [vmem:[#allocation81_spill] sm:$0xff] %v4132_v29  ;;  %v4150_v55 = vsub.f32 %v91_v30, %v1903_v59  ;;  %v4152_v19 = vsub.f32 %v97_v60, %v1907_v4  ;;  %v1909_v33 = vand.u32 4294901760, %v104_v47  ;;  %v5282_v62 = vpack.c.bf16 %v3595_v26, %v3593_v21 }
  0x66   :  { %5275 = vst [vmem:[#allocation82_spill] sm:$0xff] %v4134_v22  ;;  %5276 = vst [vmem:[#allocation83_spill] sm:$0xff] %v4136_v23  ;;  %2839 = vmatpush1.bf16.msra.mxu1 %v5277_v41  ;;  %v5283_v23 = vld [vmem:[#allocation17_spill] sm:$0xff]  ;;  %v4158_v22 = vpack.c.bf16 %v1058_v34, %v1054_v17  ;;  %v1913_v11 = vand.u32 4294901760, %v110_v56  ;;  %v1056_v61 = vand.u32 4294901760, %v101_v57  ;;  %v1060_v1 = vand.u32 4294901760, %v107_v43 }
  0x67   :  { %5279 = vst [vmem:[#allocation15_spill] sm:$0xff] %v4148_v54  ;;  %5280 = vst [vmem:[#allocation84_spill] sm:$0xff] %v4150_v55  ;;  %2841 = vmatprep.subr.bf16.mxu1 %v5282_v62  ;;  %2937 = vmatprep.subr.bf16.mxu0 %v5283_v23  ;;  %v4160_v41 = vsub.f32 %v102_v46, %v1054_v17  ;;  %v1911_v15 = vand.u32 4294901760, %v103_v16  ;;  %v4992_v30 = vand.u32 4294901760, %v3763_v37  ;;  %v5291_v23 = vld [vmem:[#allocation18_spill] sm:$0xff] }
  0x68   :  { %5281 = vst [vmem:[#allocation85_spill] sm:$0xff] %v4152_v19  ;;  %5284 = vst [vmem:[#allocation17_spill] sm:$0xff] %v4158_v22  ;;  %v4163_v60 = vsub.f32 %v108_v3, %v1058_v34  ;;  %v4165_v4 = vpack.c.bf16 %v1913_v11, %v1909_v33  ;;  %v4167_v59 = vsub.f32 %v104_v47, %v1909_v33  ;;  %2939 = vmatpush1.bf16.msra.mxu0 %v5291_v23  ;;  %v5295_v34 = vld [vmem:[#allocation22_spill] sm:$0xff] }
  0x69   :  { %5285 = vst [vmem:[#allocation86_spill] sm:$0xff] %v4160_v41  ;;  %v4169_v21 = vsub.f32 %v110_v56, %v1913_v11  ;;  %v5290_v26 = vpack.c.bf16 %v3608_v31, %v3601_v9  ;;  %v4175_v46 = vpack.c.bf16 %v1060_v1, %v1056_v61  ;;  %v4177_v17 = vsub.f32 %v101_v57, %v1056_v61  ;;  %v5297_v31 = vld [vmem:[#allocation26_spill] sm:$0xff]  ;;  %v5298_v11 = vld [vmem:[#allocation27_spill] sm:$0xff] }
  0x6a   :  { %5286 = vst [vmem:[#allocation87_spill] sm:$0xff] %v4163_v60  ;;  %5287 = vst [vmem:[#allocation88_spill] sm:$0xff] %v4165_v4  ;;  %v4179_v62 = vsub.f32 %v107_v43, %v1060_v1  ;;  %v4995_v3 = vand.u32 4294901760, %v3765_v53  ;;  %3133 = vmatprep.subr.bf16.mxu0 %v3767_v49  ;;  %v4184_v47 = vpack.c.bf16 %v1915_v48, %v1911_v15  ;;  %v4999_v56 = vand.u32 4294901760, %v5297_v31  ;;  %v5301_v43 = vld [vmem:[#allocation28_spill] sm:$0xff]  ;;  %v5302_v61 = vld [vmem:[#allocation30_spill] sm:$0xff] }
  0x6b   :  { %5288 = vst [vmem:[#allocation89_spill] sm:$0xff] %v4167_v59  ;;  %5289 = vst [vmem:[#allocation90_spill] sm:$0xff] %v4169_v21  ;;  %2843 = vmatpush1.bf16.msra.mxu1 %v5290_v26  ;;  %v1109_v9 = vsub.f32 %v3763_v37, %v4992_v30  ;;  %v5001_v33 = vand.u32 4294901760, %v5298_v11  ;;  %v5299_v26 = vld [vmem:[#allocation19_spill] sm:$0xff]  ;;  %992 = vmatmul.mubr.f32.vlgmr.msra.gmra.mrb[0].mxu0 %v5195_v18  ;;  %v5309_v37 = vld [vmem:[#allocation33_spill] sm:$0xff] }
  0x6c   :  { %5292 = vst [vmem:[#allocation18_spill] sm:$0xff] %v4175_v46  ;;  %5293 = vst [vmem:[#allocation91_spill] sm:$0xff] %v4177_v17  ;;  %2941 = vmatprep.subr.bf16.mxu1 %v5295_v34  ;;  %v1121_v57 = vsub.f32 %v3765_v53, %v4995_v3  ;;  %v1964_v30 = vsub.f32 %v5297_v31, %v4999_v56  ;;  %v5300_v3 = vld [vmem:[#allocation31_spill] sm:$0xff]  ;;  %3135 = vmatpush1.bf16.msra.mxu0 %v5302_v61  ;;  %v5305_v56 = vand.u32 4294901760, %v3798_v58 }
  0x6d   :  { %5294 = vst [vmem:[#allocation92_spill] sm:$0xff] %v4179_v62  ;;  %5296 = vst [vmem:[#allocation93_spill] sm:$0xff] %v4184_v47  ;;  %v1110_v23 = vand.u32 4294901760, %v1109_v9  ;;  %v1976_v49 = vsub.f32 %v5298_v11, %v5001_v33  ;;  %v5304_v9 = vand.u32 4294901760, %v3791_v6  ;;  %v5306_v33 = vld [vmem:[#allocation32_spill] sm:$0xff]  ;;  %v5307_v34 = vld [vmem:[#allocation35_spill] sm:$0xff]  ;;  %v4225_v62 = vsub.f32 %v109_v2, %v1915_v48  ;;  %1949 = vmatprep.mubr.f32.mxu0 %v5174_v14 }
  0x6e   :  { %614 = vmatmul.mubr.f32.vlgmr.msra.gmra.mrb[0].mxu1 %v5299_v26  ;;  %v1122_v1 = vand.u32 4294901760, %v1121_v57  ;;  %v5303_v26 = vand.u32 4294901760, %v3789_v50  ;;  %v1970_v31 = vsub.f32 %v3798_v58, %v5305_v56  ;;  %3137 = vmatprep.subr.bf16.mxu0 %v5307_v34  ;;  %v5308_v57 = vand.u32 4294901760, %v5300_v3 }
  0x6f   :  { %2943 = vmatpush1.bf16.msra.mxu1 %v5301_v43  ;;  %v1127_v53 = vsub.f32 %v3791_v6, %v5304_v9  ;;  %v1965_v43 = vand.u32 4294901760, %v1964_v30  ;;  %v1977_v11 = vand.u32 4294901760, %v1976_v49  ;;  %5311 = vst [vmem:[#allocation94_spill] sm:$0xff] %v4225_v62  ;;  %1094 = vmatprep.mubr.f32.mxu1 %v5174_v14 }
  0x70   :  { %v1115_v18 = vsub.f32 %v3789_v50, %v5303_v26  ;;  %2945 = vmatprep.subr.bf16.mxu1 %v5306_v33  ;;  %v1982_v61 = vsub.f32 %v5300_v3, %v5308_v57  ;;  %v5008_v26 = vand.u32 4294901760, %v5309_v37  ;;  %v4223_v50 = vsub.f32 %v103_v16, %v1911_v15  ;;  %v5312_v57 = vld [vmem:[#allocation34_spill] sm:$0xff]  ;;  %3139 = vmatpush1.bf16.msra.mxu0 %v3851_v32  ;;  %v5313_v16 = vld [vmem:[#allocation36_spill] sm:$0xff] }
  0x71   :  { %v4228_v9 = vpack.c.bf16 %v1122_v1, %v1110_v23  ;;  %v1128_v34 = vand.u32 4294901760, %v1127_v53  ;;  %v1971_v30 = vand.u32 4294901760, %v1970_v31  ;;  %v5015_v33 = vand.u32 4294901760, %v5312_v57  ;;  %v5314_v1 = vld [vmem:[#allocation37_spill] sm:$0xff]  ;;  %3141 = vmatprep.subr.bf16.mxu0 %v3883_v0 }
  0x72   :  { %5310 = vst [vmem:[#allocation31_spill] sm:$0xff] %v4223_v50  ;;  %v1116_v56 = vand.u32 4294901760, %v1115_v18  ;;  %v1133_v49 = vsub.f32 %v5309_v37, %v5008_v26  ;;  %v1983_v48 = vand.u32 4294901760, %v1982_v61  ;;  %v5021_v2 = vand.u32 4294901760, %v5313_v16  ;;  %v5315_v26 = vld [vmem:[#allocation38_spill] sm:$0xff] }
  0x73   :  { %2947 = vmatpush1.bf16.msra.mxu1 %v3837_v13  ;;  %v5020_v15 = vand.u32 4294901760, %v3835_v20  ;;  %v4242_v53 = vpack.c.bf16 %v1977_v11, %v1965_v43  ;;  %v1145_v31 = vsub.f32 %v5312_v57, %v5015_v33  ;;  %v5022_v32 = vand.u32 4294901760, %v5315_v26  ;;  %v5317_v43 = vld [vmem:[#allocation40_spill] sm:$0xff]  ;;  %v5318_v57 = vld [vmem:[#allocation42_spill] sm:$0xff] }
  0x74   :  { %2949 = vmatprep.subr.bf16.mxu1 %v3864_v44  ;;  %v1134_v18 = vand.u32 4294901760, %v1133_v49  ;;  %v1988_v61 = vsub.f32 %v5313_v16, %v5021_v2  ;;  %v5316_v44 = vand.u32 4294901760, %v5314_v1  ;;  %v5027_v49 = vand.u32 4294901760, %v5317_v43  ;;  %3143 = vmatpush1.bf16.msra.mxu0 %v3910_v10 }
  0x75   :  { %v2000_v23 = vsub.f32 %v3835_v20, %v5020_v15  ;;  %v1146_v0 = vand.u32 4294901760, %v1145_v31  ;;  %v1151_v33 = vsub.f32 %v5315_v26, %v5022_v32  ;;  %v4265_v15 = vpack.c.bf16 %v1128_v34, %v1116_v56  ;;  %3145 = vmatprep.subr.bf16.mxu0 %v3944_v27 }
  0x76   :  { %v1139_v11 = vsub.f32 %v5314_v1, %v5316_v44  ;;  %v4267_v2 = vpack.c.bf16 %v1983_v48, %v1971_v30  ;;  %v1989_v44 = vand.u32 4294901760, %v1988_v61  ;;  %v1994_v31 = vsub.f32 %v5317_v43, %v5027_v49  ;;  %v5321_v61 = vld [vmem:[#allocation4_spill] sm:$0xff] }
  0x77   :  { %2951 = vmatpush1.bf16.msra.mxu1 %v3897_v36  ;;  %v2001_v32 = vand.u32 4294901760, %v2000_v23  ;;  %v5319_v37 = vand.u32 4294901760, %v3862_v42  ;;  %v5320_v34 = vand.u32 4294901760, %v5318_v57  ;;  %v4280_v30 = vpack.c.bf16 %v1146_v0, %v1134_v18  ;;  %v5322_v49 = vld [vmem:[#allocation44_spill] sm:$0xff]  ;;  %v5323_v23 = vld [vmem:[#allocation45_spill] sm:$0xff] }
  0x78   :  { %2953 = vmatprep.subr.bf16.mxu1 %v3929_v35  ;;  %v1140_v13 = vand.u32 4294901760, %v1139_v11  ;;  %v1152_v48 = vand.u32 4294901760, %v1151_v33  ;;  %v5038_v10 = vand.u32 4294901760, %v5321_v61  ;;  %v5043_v43 = vand.u32 4294901760, %v5322_v49  ;;  %3147 = vmatpush1.bf16.msra.mxu0 %v3973_v63  ;;  %v5324_v33 = vld [vmem:[#allocation47_spill] sm:$0xff] }
  0x79   :  { %v2006_v36 = vsub.f32 %v3862_v42, %v5319_v37  ;;  %v1157_v56 = vsub.f32 %v5318_v57, %v5320_v34  ;;  %v1995_v35 = vand.u32 4294901760, %v1994_v31  ;;  %v5046_v11 = vand.u32 4294901760, %v5323_v23  ;;  %v5325_v34 = vld [vmem:[#allocation48_spill] sm:$0xff]  ;;  %3149 = vmatprep.subr.bf16.mxu0 %v4000_v7 }
  0x7a   :  { %v1169_v37 = vsub.f32 %v5321_v61, %v5038_v10  ;;  %v2012_v0 = vsub.f32 %v5322_v49, %v5043_v43  ;;  %v5048_v18 = vand.u32 4294901760, %v5324_v33  ;;  %v5328_v61 = vld [vmem:[#allocation6_spill] sm:$0xff] }
  0x7b   :  { %v2007_v26 = vand.u32 4294901760, %v2006_v36  ;;  %v1158_v27 = vand.u32 4294901760, %v1157_v56  ;;  %2955 = vmatpush1.bf16.msra.mxu1 %v3950_v24  ;;  %v5326_v36 = vld [vmem:[#allocation60_spill] sm:$0xff]  ;;  %v4297_v56 = vpack.c.bf16 %v2001_v32, %v1989_v44  ;;  %v2024_v63 = vsub.f32 %v5323_v23, %v5046_v11  ;;  %v5327_v24 = vld [vmem:[#allocation49_spill] sm:$0xff]  ;;  %v5330_v23 = vld [vmem:[#allocation51_spill] sm:$0xff] }
  0x7c   :  { %2957 = vmatprep.subr.bf16.mxu1 %v5326_v36  ;;  %v5050_v10 = vand.u32 4294901760, %v5327_v24  ;;  %v5051_v57 = vand.u32 4294901760, %v5328_v61  ;;  %v1170_v42 = vand.u32 4294901760, %v1169_v37  ;;  %v2013_v43 = vand.u32 4294901760, %v2012_v0  ;;  %3151 = vmatpush1.bf16.msra.mxu0 %v4029_v8 }
  0x7d   :  { %v1163_v31 = vsub.f32 %v5324_v33, %v5048_v18  ;;  %v5329_v36 = vand.u32 4294901760, %v5325_v34  ;;  %v2025_v32 = vand.u32 4294901760, %v2024_v63  ;;  %v5062_v37 = vand.u32 4294901760, %v5330_v23  ;;  %v5331_v63 = vld [vmem:[#allocation52_spill] sm:$0xff]  ;;  %3153 = vmatprep.subr.bf16.mxu0 %v4057_v45  ;;  %v5334_v45 = vld [vmem:[#allocation57_spill] sm:$0xff] }
  0x7e   :  { %v2018_v44 = vsub.f32 %v5327_v24, %v5050_v10  ;;  %v2030_v11 = vsub.f32 %v5328_v61, %v5051_v57  ;;  %v4319_v0 = vpack.c.bf16 %v1152_v48, %v1140_v13  ;;  %v4321_v18 = vpack.c.bf16 %v2007_v26, %v1995_v35 }
  0x7f   :  { %v1175_v7 = vsub.f32 %v5325_v34, %v5329_v36  ;;  %2959 = vmatpush1.bf16.msra.mxu1 %v4025_v12  ;;  %v4323_v36 = vpack.c.bf16 %v1170_v42, %v1158_v27  ;;  %v5061_v34 = vand.u32 4294901760, %v5331_v63  ;;  %v1164_v10 = vand.u32 4294901760, %v1163_v31  ;;  %v5332_v42 = vld [vmem:[#allocation54_spill] sm:$0xff]  ;;  %v5333_v27 = vld [vmem:[#allocation55_spill] sm:$0xff] }
  0x80   :  { %2961 = vmatprep.subr.bf16.mxu1 %v4044_v40  ;;  %v2019_v61 = vand.u32 4294901760, %v2018_v44  ;;  %v1181_v12 = vsub.f32 %v5330_v23, %v5062_v37  ;;  %v2031_v8 = vand.u32 4294901760, %v2030_v11  ;;  %v5065_v35 = vand.u32 4294901760, %v5332_v42  ;;  %3155 = vmatpush1.bf16.msra.mxu0 %v4091_v52  ;;  %v5337_v52 = vld [vmem:[#allocation59_spill] sm:$0xff] }
  0x81   :  { %v1176_v57 = vand.u32 4294901760, %v1175_v7  ;;  %v1193_v13 = vsub.f32 %v5331_v63, %v5061_v34  ;;  %v5070_v26 = vand.u32 4294901760, %v5333_v27  ;;  %v4336_v48 = vpack.c.bf16 %v2025_v32, %v2013_v43  ;;  %v5335_v7 = vld [vmem:[#allocation7_spill] sm:$0xff]  ;;  %v5336_v43 = vld [vmem:[#allocation58_spill] sm:$0xff]  ;;  %3157 = vmatprep.subr.bf16.mxu0 %v4117_v38 }
  0x82   :  { %v1182_v40 = vand.u32 4294901760, %v1181_v12  ;;  %v5076_v31 = vand.u32 4294901760, %v5334_v45  ;;  %v5077_v44 = vand.u32 4294901760, %v5335_v7  ;;  %v2036_v34 = vsub.f32 %v5332_v42, %v5065_v35 }
  0x83   :  { %2963 = vmatpush1.bf16.msra.mxu1 %v4076_v39  ;;  %v1194_v11 = vand.u32 4294901760, %v1193_v13  ;;  %v2048_v37 = vsub.f32 %v5333_v27, %v5070_v26  ;;  %v5080_v35 = vand.u32 4294901760, %v5337_v52  ;;  %v5338_v39 = vld [vmem:[#allocation61_spill] sm:$0xff]  ;;  %v4359_v63 = vpack.c.bf16 %v1176_v57, %v1164_v10  ;;  %v5340_v57 = vld [vmem:[#allocation63_spill] sm:$0xff] }
  0x84   :  { %2965 = vmatprep.subr.bf16.mxu1 %v4104_v28  ;;  %v1187_v12 = vsub.f32 %v5334_v45, %v5076_v31  ;;  %v1199_v13 = vsub.f32 %v5335_v7, %v5077_v44  ;;  %v5079_v42 = vand.u32 4294901760, %v5338_v39  ;;  %v4361_v26 = vpack.c.bf16 %v2031_v8, %v2019_v61  ;;  %3159 = vmatpush1.bf16.msra.mxu0 %v4148_v54  ;;  %v5342_v54 = vld [vmem:[#allocation64_spill] sm:$0xff] }
  0x85   :  { %v4363_v32 = vpack.c.bf16 %v1194_v11, %v1182_v40  ;;  %v5339_v38 = vand.u32 4294901760, %v5336_v43  ;;  %v2037_v27 = vand.u32 4294901760, %v2036_v34  ;;  %v2049_v31 = vand.u32 4294901760, %v2048_v37  ;;  %3161 = vmatprep.subr.bf16.mxu0 %v4165_v4  ;;  %v5344_v4 = vld [vmem:[#allocation67_spill] sm:$0xff] }
  0x86   :  { %v2054_v44 = vsub.f32 %v5337_v52, %v5080_v35  ;;  %v1205_v7 = vsub.f32 %v5338_v39, %v5079_v42  ;;  %v1188_v10 = vand.u32 4294901760, %v1187_v12  ;;  %v1200_v8 = vand.u32 4294901760, %v1199_v13  ;;  %v5341_v13 = vld [vmem:[#allocation9_spill] sm:$0xff] }
  0x87   :  { %v2042_v28 = vsub.f32 %v5336_v43, %v5339_v38  ;;  %2967 = vmatpush1.bf16.msra.mxu1 %v4132_v29  ;;  %v5090_v40 = vand.u32 4294901760, %v3998_v51  ;;  %v5091_v38 = vand.u32 4294901760, %v5340_v57  ;;  %v5092_v11 = vand.u32 4294901760, %v4012_v25 }
  0x88   :  { %2969 = vmatprep.subr.bf16.mxu1 %v4158_v22  ;;  %v2055_v34 = vand.u32 4294901760, %v2054_v44  ;;  %v1206_v37 = vand.u32 4294901760, %v1205_v7  ;;  %v5097_v35 = vand.u32 4294901760, %v5341_v13  ;;  %v4389_v22 = vpack.c.bf16 %v2049_v31, %v2037_v27  ;;  %v5343_v7 = vld [vmem:[#allocation66_spill] sm:$0xff]  ;;  %3163 = vmatpush1.bf16.msra.mxu0 %v4184_v47  ;;  %v5347_v47 = vld [vmem:[#allocation69_spill] sm:$0xff] }
  0x89   :  { %v2043_v61 = vand.u32 4294901760, %v2042_v28  ;;  %v1217_v42 = vsub.f32 %v3998_v51, %v5090_v40  ;;  %v2060_v12 = vsub.f32 %v5340_v57, %v5091_v38  ;;  %v2072_v28 = vsub.f32 %v4012_v25, %v5092_v11  ;;  %3165 = vmatprep.subr.bf16.mxu0 %v4242_v53  ;;  %v5349_v53 = vld [vmem:[#allocation21_spill] sm:$0xff] }
  0x8a   :  { %v5100_v44 = vand.u32 4294901760, %v5343_v7  ;;  %v1211_v29 = vsub.f32 %v5341_v13, %v5097_v35  ;;  %v5345_v27 = vand.u32 4294901760, %v5342_v54  ;;  %v4413_v35 = vpack.c.bf16 %v1200_v8, %v1188_v10 }
  0x8b   :  { %2971 = vmatpush1.bf16.msra.mxu1 %v4175_v46  ;;  %v1218_v40 = vand.u32 4294901760, %v1217_v42  ;;  %v2061_v38 = vand.u32 4294901760, %v2060_v12  ;;  %v2073_v11 = vand.u32 4294901760, %v2072_v28  ;;  %v5346_v42 = vand.u32 4294901760, %v5344_v4  ;;  %1955 = vmatmul.mubr.f32.vlgmr.msra.gmra.mrb[2].mxu0 %v5349_v53 }
  0x8c   :  { %v1223_v31 = vsub.f32 %v5342_v54, %v5345_v27  ;;  %2973 = vmatprep.subr.bf16.mxu1 %v4228_v9  ;;  %v2066_v39 = vsub.f32 %v5343_v7, %v5100_v44  ;;  %v5102_v46 = vand.u32 4294901760, %v5347_v47  ;;  %v4415_v13 = vpack.c.bf16 %v2055_v34, %v2043_v61  ;;  %v5348_v9 = vld [vmem:[#allocation70_spill] sm:$0xff]  ;;  %3167 = vmatpush1.bf16.msra.mxu0 %v4267_v2  ;;  %v5351_v34 = vld [vmem:[#allocation71_spill] sm:$0xff] }
  0x8d   :  { %v2078_v12 = vsub.f32 %v5344_v4, %v5346_v42  ;;  %v4417_v27 = vpack.c.bf16 %v1218_v40, %v1206_v37  ;;  %v5103_v54 = vand.u32 4294901760, %v5348_v9  ;;  %v1212_v28 = vand.u32 4294901760, %v1211_v29  ;;  %v5350_v40 = vld [vmem:[#allocation12_spill] sm:$0xff]  ;;  %3169 = vmatprep.subr.bf16.mxu0 %v4297_v56  ;;  %2185 = vmatprep.mubr.f32.mxu0 %v5174_v14 }
  0x8e   :  { %1100 = vmatmul.mubr.f32.vlgmr.msra.gmra.mrb[2].mxu1 %v5349_v53  ;;  %v1224_v44 = vand.u32 4294901760, %v1223_v31  ;;  %v2067_v7 = vand.u32 4294901760, %v2066_v39  ;;  %v1229_v42 = vsub.f32 %v5347_v47, %v5102_v46  ;;  %v5107_v61 = vand.u32 4294901760, %v5350_v40  ;;  %v5352_v31 = vld [vmem:[#allocation73_spill] sm:$0xff] }
  0x8f   :  { %2975 = vmatpush1.bf16.msra.mxu1 %v4265_v15  ;;  %v2079_v10 = vand.u32 4294901760, %v2078_v12  ;;  %v1241_v8 = vsub.f32 %v5348_v9, %v5103_v54  ;;  %v5106_v37 = vand.u32 4294901760, %v5351_v34  ;;  %v3180_v39 = vpack.c.bf16 %v2073_v11, %v2061_v38  ;;  %v5353_v15 = vld [vmem:[#allocation74_spill] sm:$0xff]  ;;  %v5354_v9 = vld [vmem:[#allocation76_spill] sm:$0xff]  ;;  %1330 = vmatprep.mubr.f32.mxu1 %v5174_v14  ;;  %v5355_v38 = vld [vmem:[#allocation77_spill] sm:$0xff] }
  0x90   :  { %2977 = vmatprep.subr.bf16.mxu1 %v4280_v30  ;;  %v1230_v29 = vand.u32 4294901760, %v1229_v42  ;;  %v5108_v53 = vand.u32 4294901760, %v5352_v31  ;;  %v5109_v46 = vand.u32 4294901760, %v5353_v15  ;;  %v2084_v12 = vsub.f32 %v5350_v40, %v5107_v61  ;;  %3171 = vmatpush1.bf16.msra.mxu0 %v4321_v18 }
  0x91   :  { %v1242_v2 = vand.u32 4294901760, %v1241_v8  ;;  %v2096_v54 = vsub.f32 %v5351_v34, %v5106_v37  ;;  %v5111_v47 = vand.u32 4294901760, %v5354_v9  ;;  %v5115_v11 = vand.u32 4294901760, %v5355_v38  ;;  %3173 = vmatprep.subr.bf16.mxu0 %v4336_v48  ;;  %v5359_v48 = vld [vmem:[#allocation80_spill] sm:$0xff] }
  0x92   :  { %v1235_v30 = vsub.f32 %v5352_v31, %v5108_v53  ;;  %v1247_v56 = vsub.f32 %v5353_v15, %v5109_v46  ;;  %v2990_v8 = vpack.c.bf16 %v1224_v44, %v1212_v28  ;;  %v3182_v37 = vpack.c.bf16 %v2079_v10, %v2067_v7  ;;  %v5357_v28 = vld [vmem:[#allocation14_spill] sm:$0xff]  ;;  %v5358_v15 = vld [vmem:[#allocation79_spill] sm:$0xff] }
  0x93   :  { %2979 = vmatpush1.bf16.msra.mxu1 %v4319_v0  ;;  %v2090_v61 = vsub.f32 %v5354_v9, %v5111_v47  ;;  %v2992_v53 = vpack.c.bf16 %v1242_v2, %v1230_v29  ;;  %v2085_v46 = vand.u32 4294901760, %v2084_v12  ;;  %v2102_v42 = vsub.f32 %v5355_v38, %v5115_v11  ;;  %v5360_v12 = vld [vmem:[#allocation82_spill] sm:$0xff] }
  0x94   :  { %2981 = vmatprep.subr.bf16.mxu1 %v4323_v36  ;;  %v5356_v0 = vand.u32 4294901760, %v4106_v5  ;;  %v2097_v44 = vand.u32 4294901760, %v2096_v54  ;;  %v1236_v7 = vand.u32 4294901760, %v1235_v30  ;;  %v5114_v10 = vand.u32 4294901760, %v5357_v28  ;;  %3175 = vmatpush1.bf16.msra.mxu0 %v4361_v26 }
  0x95   :  { %v5116_v47 = vand.u32 4294901760, %v5358_v15  ;;  %v1248_v9 = vand.u32 4294901760, %v1247_v56  ;;  %v2091_v36 = vand.u32 4294901760, %v2090_v61  ;;  %v2103_v31 = vand.u32 4294901760, %v2102_v42  ;;  %3177 = vmatprep.subr.bf16.mxu0 %v4389_v22 }
  0x96   :  { %v1253_v18 = vsub.f32 %v4106_v5, %v5356_v0  ;;  %v5117_v29 = vand.u32 4294901760, %v5359_v48  ;;  %v1265_v2 = vsub.f32 %v5357_v28, %v5114_v10  ;;  %v5118_v30 = vand.u32 4294901760, %v5360_v12  ;;  %v5361_v0 = vld [vmem:[#allocation83_spill] sm:$0xff] }
  0x97   :  { %2983 = vmatpush1.bf16.msra.mxu1 %v4359_v63  ;;  %v2108_v54 = vsub.f32 %v5358_v15, %v5116_v47  ;;  %v5120_v56 = vand.u32 4294901760, %v5361_v0  ;;  %v5121_v26 = vand.u32 4294901760, %v4150_v55  ;;  %v5124_v42 = vand.u32 4294901760, %v4152_v19 }
  0x98   :  { %2985 = vmatprep.subr.bf16.mxu1 %v4363_v32  ;;  %v1254_v61 = vand.u32 4294901760, %v1253_v18  ;;  %v2120_v63 = vsub.f32 %v5359_v48, %v5117_v29  ;;  %v1266_v10 = vand.u32 4294901760, %v1265_v2  ;;  %v1259_v47 = vsub.f32 %v5360_v12, %v5118_v30  ;;  %3179 = vmatpush1.bf16.msra.mxu0 %v4415_v13 }
  0x99   :  { %v2109_v11 = vand.u32 4294901760, %v2108_v54  ;;  %v1271_v32 = vsub.f32 %v5361_v0, %v5120_v56  ;;  %v2114_v18 = vsub.f32 %v4150_v55, %v5121_v26  ;;  %v2126_v29 = vsub.f32 %v4152_v19, %v5124_v42  ;;  %3181 = vmatprep.subr.bf16.mxu0 %v3180_v39  ;;  %v5362_v39 = vld [vmem:[#allocation92_spill] sm:$0xff] }
  0x9a   :  { %v2121_v22 = vand.u32 4294901760, %v2120_v63  ;;  %v5134_v2 = vand.u32 4294901760, %v4160_v41  ;;  %v3184_v54 = vpack.c.bf16 %v2097_v44, %v2085_v46  ;;  %v2994_v30 = vpack.c.bf16 %v1248_v9, %v1236_v7 }
  0x9b   :  { %2987 = vmatpush1.bf16.msra.mxu1 %v4413_v35  ;;  %v3186_v12 = vpack.c.bf16 %v2103_v31, %v2091_v36  ;;  %v5133_v56 = vand.u32 4294901760, %v4163_v60  ;;  %v2996_v63 = vpack.c.bf16 %v1266_v10, %v1254_v61  ;;  %v1260_v26 = vand.u32 4294901760, %v1259_v47 }
  0x9c   :  { %2989 = vmatprep.subr.bf16.mxu1 %v4417_v27  ;;  %v1272_v55 = vand.u32 4294901760, %v1271_v32  ;;  %v1277_v42 = vsub.f32 %v4160_v41, %v5134_v2  ;;  %v3188_v19 = vpack.c.bf16 %v2121_v22, %v2109_v11  ;;  %v5132_v46 = vand.u32 4294901760, %v4167_v59  ;;  %3183 = vmatpush1.bf16.msra.mxu0 %v3182_v37  ;;  %v5378_v2 = vld [vmem:[#allocation52_spill] sm:$0xff] }
  0x9d   :  { %v1289_v35 = vsub.f32 %v4163_v60, %v5133_v56  ;;  %v5129_v13 = vand.u32 4294901760, %v4169_v21  ;;  %v2115_v9 = vand.u32 4294901760, %v2114_v18  ;;  %v2127_v31 = vand.u32 4294901760, %v2126_v29  ;;  %3185 = vmatprep.subr.bf16.mxu0 %v3184_v54 }
  0x9e   :  { %v5127_v27 = vand.u32 4294901760, %v4177_v17  ;;  %v5128_v47 = vand.u32 4294901760, %v5362_v39  ;;  %v1278_v44 = vand.u32 4294901760, %v1277_v42  ;;  %v2132_v11 = vsub.f32 %v4167_v59, %v5132_v46  ;;  %v5377_v46 = vld [vmem:[#allocation6_spill] sm:$0xff] }
  0x9f   :  { %2991 = vmatpush1.bf16.msra.mxu1 %v2990_v8  ;;  %v2144_v7 = vsub.f32 %v4169_v21, %v5129_v13  ;;  %v5130_v10 = vand.u32 4294901760, %v4223_v50  ;;  %v1290_v36 = vand.u32 4294901760, %v1289_v35  ;;  %v5131_v8 = vand.u32 4294901760, %v4225_v62 }
  0xa0   :  { %2993 = vmatprep.subr.bf16.mxu1 %v2992_v53  ;;  %v1283_v29 = vsub.f32 %v4177_v17, %v5127_v27  ;;  %v1295_v37 = vsub.f32 %v5362_v39, %v5128_v47  ;;  %v2133_v61 = vand.u32 4294901760, %v2132_v11  ;;  %v2998_v22 = vpack.c.bf16 %v1272_v55, %v1260_v26  ;;  %3187 = vmatpush1.bf16.msra.mxu0 %v3186_v12  ;;  %v5363_v55 = vld [vmem:[#allocation23_spill] sm:$0xff]  ;;  %v5364_v26 = vld [vmem:[#allocation24_spill] sm:$0xff] }
  0xa1   :  { %v2145_v42 = vand.u32 4294901760, %v2144_v7  ;;  %v2138_v32 = vsub.f32 %v4223_v50, %v5130_v10  ;;  %v2150_v53 = vsub.f32 %v4225_v62, %v5131_v8  ;;  %v3190_v18 = vpack.c.bf16 %v2127_v31, %v2115_v9  ;;  %3189 = vmatprep.subr.bf16.mxu0 %v3188_v19  ;;  %v5366_v12 = vld [vmem:[#allocation27_spill] sm:$0xff]  ;;  %v5367_v31 = vld [vmem:[#allocation29_spill] sm:$0xff]  ;;  %v5379_v50 = vld [vmem:[#allocation54_spill] sm:$0xff] }
  0xa2   :  { %v1284_v54 = vand.u32 4294901760, %v1283_v29  ;;  %v1296_v35 = vand.u32 4294901760, %v1295_v37  ;;  %v3000_v47 = vpack.c.bf16 %v1290_v36, %v1278_v44  ;;  %v3004_v8 = vpack.c.bf16 %v5364_v26, %v5363_v55  ;;  %v5369_v44 = vld [vmem:[#allocation34_spill] sm:$0xff]  ;;  %v5380_v39 = vld [vmem:[#allocation55_spill] sm:$0xff] }
  0xa3   :  { %2995 = vmatpush1.bf16.msra.mxu1 %v2994_v30  ;;  %v2139_v27 = vand.u32 4294901760, %v2138_v32  ;;  %v3192_v11 = vpack.c.bf16 %v2145_v42, %v2133_v61  ;;  %v2151_v7 = vand.u32 4294901760, %v2150_v53  ;;  %v5365_v30 = vld [vmem:[#allocation26_spill] sm:$0xff]  ;;  %v3006_v29 = vpack.c.bf16 %v3791_v6, %v5367_v31  ;;  %v5371_v61 = vld [vmem:[#allocation40_spill] sm:$0xff]  ;;  %v5372_v42 = vld [vmem:[#allocation3_spill] sm:$0xff] }
  0xa4   :  { %2997 = vmatprep.subr.bf16.mxu1 %v2996_v63  ;;  %3191 = vmatpush1.bf16.msra.mxu0 %v3190_v18  ;;  %v3002_v13 = vpack.c.bf16 %v1296_v35, %v1284_v54  ;;  %v3196_v9 = vpack.c.bf16 %v5366_v12, %v5365_v30  ;;  %v3198_v19 = vpack.c.bf16 %v5300_v3, %v3798_v58  ;;  %v5368_v63 = vld [vmem:[#allocation33_spill] sm:$0xff]  ;;  %v5374_v53 = vld [vmem:[#allocation4_spill] sm:$0xff]  ;;  %v5383_v59 = vand.u32 4294901760, %v5365_v30 }
  0xa5   :  { %v3194_v10 = vpack.c.bf16 %v2151_v7, %v2139_v27  ;;  %3193 = vmatprep.subr.bf16.mxu0 %v3192_v11  ;;  %v3008_v36 = vpack.c.bf16 %v5369_v44, %v5368_v63  ;;  %v3200_v27 = vpack.c.bf16 %v3835_v20, %v5313_v16  ;;  %v3202_v32 = vpack.c.bf16 %v5372_v42, %v5371_v61  ;;  %v5375_v54 = vld [vmem:[#allocation45_spill] sm:$0xff]  ;;  %v5376_v11 = vld [vmem:[#allocation48_spill] sm:$0xff] }
  0xa6   :  { %v3204_v35 = vpack.c.bf16 %v5375_v54, %v5322_v49  ;;  %v3014_v7 = vpack.c.bf16 %v5376_v11, %v5324_v33  ;;  %v3206_v56 = vpack.c.bf16 %v5377_v46, %v5327_v24  ;;  %v3016_v62 = vpack.c.bf16 %v5378_v2, %v5330_v23 }
  0xa7   :  { %2999 = vmatpush1.bf16.msra.mxu1 %v2998_v22  ;;  %v5373_v22 = vld [vmem:[#allocation42_spill] sm:$0xff]  ;;  %v3208_v17 = vpack.c.bf16 %v5380_v39, %v5379_v50  ;;  %v5384_v60 = vand.u32 4294901760, %v5366_v12  ;;  %v5387_v48 = vand.u32 4294901760, %v3798_v58  ;;  %v5390_v30 = vand.u32 4294901760, %v5369_v44 }
  0xa8   :  { %3001 = vmatprep.subr.bf16.mxu1 %v3000_v47  ;;  %v5370_v47 = vld [vmem:[#allocation38_spill] sm:$0xff]  ;;  %v3012_v18 = vpack.c.bf16 %v5374_v53, %v5373_v22  ;;  %3195 = vmatpush1.bf16.msra.mxu0 %v3194_v10  ;;  %v5382_v10 = vand.u32 4294901760, %v5364_v26  ;;  %v5389_v26 = vand.u32 4294901760, %v5368_v63  ;;  %v5394_v58 = vand.u32 4294901760, %v5314_v1 }
  0xa9   :  { %v3010_v37 = vpack.c.bf16 %v5370_v47, %v5314_v1  ;;  %3197 = vmatprep.subr.bf16.mxu0 %v3196_v9  ;;  %v4571_v41 = vpack.c.bf16 %v5384_v60, %v5383_v59  ;;  %v5386_v9 = vand.u32 4294901760, %v3791_v6  ;;  %v5391_v60 = vld [vmem:[#allocation16_spill] sm:$0xff]  ;;  %v5392_v6 = vand.u32 4294901760, %v5313_v16 }
  0xaa   :  { %v5393_v59 = vand.u32 4294901760, %v3835_v20  ;;  %v5397_v63 = vand.u32 4294901760, %v5372_v42  ;;  %v5398_v16 = vand.u32 4294901760, %v5373_v22  ;;  %v5399_v20 = vand.u32 4294901760, %v5374_v53 }
  0xab   :  { %3003 = vmatpush1.bf16.msra.mxu1 %v3002_v13  ;;  %v5381_v13 = vand.u32 4294901760, %v5363_v55  ;;  %v5388_v55 = vand.u32 4294901760, %v5300_v3  ;;  %2187 = vmatmul.mubr.f32.vlgmr.msra.gmra.mrb[2].mxu0 %v5391_v60  ;;  %v5395_v3 = vand.u32 4294901760, %v5370_v47  ;;  %v5400_v1 = vand.u32 4294901760, %v5322_v49 }
  0xac   :  { %3005 = vmatprep.subr.bf16.mxu1 %v3004_v8  ;;  %v5385_v8 = vand.u32 4294901760, %v5367_v31  ;;  %v4597_v12 = vpack.c.bf16 %v5393_v59, %v5392_v6  ;;  %v5396_v31 = vand.u32 4294901760, %v5371_v61  ;;  %3199 = vmatpush1.bf16.msra.mxu0 %v3198_v19  ;;  %v5401_v47 = vand.u32 4294901760, %v5375_v54 }
  0xad   :  { %v4565_v21 = vpack.c.bf16 %v5382_v10, %v5381_v13  ;;  %v4583_v15 = vpack.c.bf16 %v5388_v55, %v5387_v48  ;;  %v4589_v13 = vpack.c.bf16 %v5390_v30, %v5389_v26  ;;  %v4603_v48 = vpack.c.bf16 %v5395_v3, %v5394_v58  ;;  %3201 = vmatprep.subr.bf16.mxu0 %v3200_v27 }
  0xae   :  { %v4577_v0 = vpack.c.bf16 %v5386_v9, %v5385_v8  ;;  %1332 = vmatmul.mubr.f32.vlgmr.msra.gmra.mrb[2].mxu1 %v5391_v60  ;;  %v4609_v44 = vpack.c.bf16 %v5397_v63, %v5396_v31  ;;  %v4615_v10 = vpack.c.bf16 %v5399_v20, %v5398_v16  ;;  %v4621_v8 = vpack.c.bf16 %v5401_v47, %v5400_v1  ;;  %v5427_v31 = vld [vmem:[#allocation9_spill] sm:$0xff]  ;;  %v5429_v16 = vld [vmem:[#allocation64_spill] sm:$0xff]  ;;  %v5432_v47 = vld [vmem:[#allocation66_spill] sm:$0xff] }
  0xaf   :  { %3007 = vmatpush1.bf16.msra.mxu1 %v3006_v29  ;;  %v5402_v61 = vand.u32 4294901760, %v5324_v33  ;;  %v5403_v42 = vand.u32 4294901760, %v5376_v11  ;;  %v5404_v29 = vand.u32 4294901760, %v5327_v24  ;;  %v5405_v19 = vand.u32 4294901760, %v5377_v46  ;;  %1466 = vmatprep.mubr.f32.mxu1 %v5174_v14  ;;  %v5414_v46 = vld [vmem:[#allocation7_spill] sm:$0xff] }
  0xb0   :  { %3009 = vmatprep.subr.bf16.mxu1 %v3008_v36  ;;  %v5407_v49 = vand.u32 4294901760, %v5330_v23  ;;  %v5408_v53 = vand.u32 4294901760, %v5378_v2  ;;  %v5410_v33 = vand.u32 4294901760, %v5379_v50  ;;  %v5411_v11 = vand.u32 4294901760, %v5380_v39  ;;  %2321 = vmatprep.mubr.f32.mxu0 %v5174_v14  ;;  %v5420_v50 = vld [vmem:[#allocation61_spill] sm:$0xff] }
  0xb1   :  { %v4627_v9 = vpack.c.bf16 %v5403_v42, %v5402_v61  ;;  %v4633_v22 = vpack.c.bf16 %v5405_v19, %v5404_v29  ;;  %v5413_v24 = vand.u32 4294901760, %v5334_v45  ;;  %v5415_v36 = vand.u32 4294901760, %v5414_v46  ;;  %v5436_v19 = vld [vmem:[#allocation69_spill] sm:$0xff]  ;;  %3203 = vmatpush1.bf16.msra.mxu0 %v3202_v32 }
  0xb2   :  { %v4639_v54 = vpack.c.bf16 %v5408_v53, %v5407_v49  ;;  %v4645_v55 = vpack.c.bf16 %v5411_v11, %v5410_v33  ;;  %v5417_v23 = vand.u32 4294901760, %v5336_v43  ;;  %v5418_v2 = vand.u32 4294901760, %v5337_v52  ;;  %v5438_v53 = vld [vmem:[#allocation70_spill] sm:$0xff]  ;;  %3205 = vmatprep.subr.bf16.mxu0 %v3204_v35 }
  0xb3   :  { %5406 = vst [vmem:[#allocation36_spill] sm:$0xff] %v4633_v22  ;;  %v4653_v27 = vpack.c.bf16 %v5415_v36, %v5413_v24  ;;  %v5421_v39 = vand.u32 4294901760, %v5420_v50  ;;  %v5422_v30 = vand.u32 4294901760, %v3998_v51  ;;  %v5424_v59 = vand.u32 4294901760, %v5340_v57  ;;  %3011 = vmatpush1.bf16.msra.mxu1 %v3010_v37 }
  0xb4   :  { %5409 = vst [vmem:[#allocation37_spill] sm:$0xff] %v4639_v54  ;;  %5412 = vst [vmem:[#allocation44_spill] sm:$0xff] %v4645_v55  ;;  %v4659_v26 = vpack.c.bf16 %v5418_v2, %v5417_v23  ;;  %v5425_v58 = vand.u32 4294901760, %v4012_v25  ;;  %v5428_v63 = vand.u32 4294901760, %v5427_v31  ;;  %v5430_v20 = vand.u32 4294901760, %v5429_v16  ;;  %v5444_v2 = vld [vmem:[#allocation73_spill] sm:$0xff]  ;;  %3013 = vmatprep.subr.bf16.mxu1 %v3012_v18 }
  0xb5   :  { %5416 = vst [vmem:[#allocation47_spill] sm:$0xff] %v4653_v27  ;;  %v4665_v6 = vpack.c.bf16 %v5422_v30, %v5421_v39  ;;  %v5433_v61 = vand.u32 4294901760, %v5432_v47  ;;  %v5434_v42 = vand.u32 4294901760, %v5344_v4  ;;  %v5437_v49 = vand.u32 4294901760, %v5436_v19  ;;  %v5446_v30 = vld [vmem:[#allocation74_spill] sm:$0xff]  ;;  %v5466_v18 = vld [vmem:[#allocation84_spill] sm:$0xff]  ;;  %3207 = vmatpush1.bf16.msra.mxu0 %v3206_v56 }
  0xb6   :  { %5419 = vst [vmem:[#allocation49_spill] sm:$0xff] %v4659_v26  ;;  %v4671_v3 = vpack.c.bf16 %v5425_v58, %v5424_v59  ;;  %v4677_v1 = vpack.c.bf16 %v5430_v20, %v5428_v63  ;;  %v5439_v33 = vand.u32 4294901760, %v5438_v53  ;;  %v5441_v24 = vand.u32 4294901760, %v5350_v40  ;;  %v5449_v63 = vld [vmem:[#allocation76_spill] sm:$0xff]  ;;  %3209 = vmatprep.subr.bf16.mxu0 %v3208_v17 }
  0xb7   :  { %5423 = vst [vmem:[#allocation51_spill] sm:$0xff] %v4665_v6  ;;  %v4683_v29 = vpack.c.bf16 %v5434_v42, %v5433_v61  ;;  %v5442_v36 = vand.u32 4294901760, %v5351_v34  ;;  %v5445_v39 = vand.u32 4294901760, %v5444_v2  ;;  %v5447_v59 = vand.u32 4294901760, %v5446_v30  ;;  %3015 = vmatpush1.bf16.msra.mxu1 %v3014_v7 }
  0xb8   :  { %5426 = vst [vmem:[#allocation57_spill] sm:$0xff] %v4671_v3  ;;  %5431 = vst [vmem:[#allocation58_spill] sm:$0xff] %v4677_v1  ;;  %v4689_v11 = vpack.c.bf16 %v5439_v33, %v5437_v49  ;;  %v5450_v20 = vand.u32 4294901760, %v5449_v63  ;;  %v5451_v61 = vand.u32 4294901760, %v5355_v38  ;;  %v5453_v37 = vand.u32 4294901760, %v4106_v5  ;;  %v5456_v33 = vld [vmem:[#allocation79_spill] sm:$0xff]  ;;  %3017 = vmatprep.subr.bf16.mxu1 %v3016_v62 }
  0xb9   :  { %5435 = vst [vmem:[#allocation59_spill] sm:$0xff] %v4683_v29  ;;  %v4695_v23 = vpack.c.bf16 %v5442_v36, %v5441_v24  ;;  %v4701_v58 = vpack.c.bf16 %v5447_v59, %v5445_v39  ;;  %v5454_v32 = vand.u32 4294901760, %v5357_v28  ;;  %v5457_v24 = vand.u32 4294901760, %v5456_v33  ;;  %v5458_v36 = vld [vmem:[#allocation80_spill] sm:$0xff]  ;;  %v5461_v59 = vld [vmem:[#allocation82_spill] sm:$0xff] }
  0xba   :  { %5440 = vst [vmem:[#allocation63_spill] sm:$0xff] %v4689_v11  ;;  %v4707_v42 = vpack.c.bf16 %v5451_v61, %v5450_v20  ;;  %v5459_v60 = vand.u32 4294901760, %v5458_v36  ;;  %v5467_v35 = vand.u32 4294901760, %v5466_v18  ;;  %v5468_v61 = vld [vmem:[#allocation85_spill] sm:$0xff]  ;;  %v3022_v7 = vpack.c.bf16 %v5429_v16, %v5427_v31  ;;  %v5492_v31 = vld [vmem:[#allocation32_spill] sm:$0xff]  ;;  %v5493_v16 = vld [vmem:[#allocation35_spill] sm:$0xff] }
  0xbb   :  { %5443 = vst [vmem:[#allocation67_spill] sm:$0xff] %v4695_v23  ;;  %5448 = vst [vmem:[#allocation21_spill] sm:$0xff] %v4701_v58  ;;  %v4713_v49 = vpack.c.bf16 %v5454_v32, %v5453_v37  ;;  %v5462_v58 = vand.u32 4294901760, %v5461_v59  ;;  %v5463_v23 = vld [vmem:[#allocation83_spill] sm:$0xff]  ;;  %v5471_v37 = vld [vmem:[#allocation86_spill] sm:$0xff]  ;;  %v3214_v56 = vpack.c.bf16 %v5344_v4, %v5432_v47  ;;  %v3028_v4 = vpack.c.bf16 %v5357_v28, %v4106_v5 }
  0xbc   :  { %5452 = vst [vmem:[#allocation12_spill] sm:$0xff] %v4707_v42  ;;  %v4719_v39 = vpack.c.bf16 %v5459_v60, %v5457_v24  ;;  %v5464_v11 = vand.u32 4294901760, %v5463_v23  ;;  %v5469_v42 = vand.u32 4294901760, %v5468_v61  ;;  %v5472_v32 = vand.u32 4294901760, %v5471_v37  ;;  %v5475_v60 = vld [vmem:[#allocation89_spill] sm:$0xff]  ;;  %v5494_v47 = vld [vmem:[#allocation2_spill] sm:$0xff] }
  0xbd   :  { %5455 = vst [vmem:[#allocation71_spill] sm:$0xff] %v4713_v49  ;;  %v5473_v49 = vld [vmem:[#allocation87_spill] sm:$0xff]  ;;  %v5476_v24 = vand.u32 4294901760, %v5475_v60  ;;  %v3220_v17 = vpack.c.bf16 %v5458_v36, %v5456_v33  ;;  %v3030_v62 = vpack.c.bf16 %v5463_v23, %v5461_v59  ;;  %v5488_v28 = vld [vmem:[#allocation25_spill] sm:$0xff]  ;;  %v5498_v23 = vld [vmem:[#allocation46_spill] sm:$0xff] }
  0xbe   :  { %5460 = vst [vmem:[#allocation77_spill] sm:$0xff] %v4719_v39  ;;  %v4725_v20 = vpack.c.bf16 %v5464_v11, %v5462_v58  ;;  %v4731_v29 = vpack.c.bf16 %v5469_v42, %v5467_v35  ;;  %v5474_v1 = vand.u32 4294901760, %v5473_v49  ;;  %v5477_v39 = vld [vmem:[#allocation90_spill] sm:$0xff]  ;;  %v5479_v11 = vld [vmem:[#allocation91_spill] sm:$0xff]  ;;  %v5503_v33 = vld [vmem:[#allocation8_spill] sm:$0xff] }
  0xbf   :  { %v5478_v6 = vand.u32 4294901760, %v5477_v39  ;;  %v5480_v58 = vand.u32 4294901760, %v5479_v11  ;;  %v5483_v42 = vld [vmem:[#allocation31_spill] sm:$0xff]  ;;  %v5504_v36 = vld [vmem:[#allocation60_spill] sm:$0xff]  ;;  %v5506_v59 = vld [vmem:[#allocation10_spill] sm:$0xff] }
  0xc0   :  { %5465 = vst [vmem:[#allocation14_spill] sm:$0xff] %v4725_v20  ;;  %5470 = vst [vmem:[#allocation23_spill] sm:$0xff] %v4731_v29  ;;  %v4737_v3 = vpack.c.bf16 %v5474_v1, %v5472_v32  ;;  %v5481_v20 = vld [vmem:[#allocation92_spill] sm:$0xff]  ;;  %v5484_v35 = vand.u32 4294901760, %v5483_v42  ;;  %v5485_v29 = vld [vmem:[#allocation94_spill] sm:$0xff]  ;;  %v3018_v1 = vpack.c.bf16 %v5414_v46, %v5334_v45  ;;  %v3212_v32 = vpack.c.bf16 %v4012_v25, %v5340_v57 }
  0xc1   :  { %v4743_v26 = vpack.c.bf16 %v5478_v6, %v5476_v24  ;;  %v5482_v27 = vand.u32 4294901760, %v5481_v20  ;;  %v5486_v54 = vand.u32 4294901760, %v5485_v29  ;;  %v3210_v6 = vpack.c.bf16 %v5337_v52, %v5336_v43  ;;  %v5490_v46 = vld [vmem:[#allocation28_spill] sm:$0xff]  ;;  %v5512_v24 = vld [vmem:[#allocation13_spill] sm:$0xff] }
  0xc2   :  { %3019 = vmatpush1.bf16.msra.mxu1 %v3018_v1  ;;  %v3024_v45 = vpack.c.bf16 %v5438_v53, %v5436_v19  ;;  %v3216_v52 = vpack.c.bf16 %v5351_v34, %v5350_v40  ;;  %v3218_v25 = vpack.c.bf16 %v5355_v38, %v5449_v63  ;;  %v3222_v43 = vpack.c.bf16 %v5468_v61, %v5466_v18  ;;  %v5487_v38 = vld [vmem:[#allocation22_spill] sm:$0xff]  ;;  %v5496_v19 = vld [vmem:[#allocation41_spill] sm:$0xff]  ;;  %v5497_v53 = vld [vmem:[#allocation43_spill] sm:$0xff] }
  0xc3   :  { %v4749_v55 = vpack.c.bf16 %v5482_v27, %v5480_v58  ;;  %v4755_v22 = vpack.c.bf16 %v5486_v54, %v5484_v35  ;;  %v3020_v27 = vpack.c.bf16 %v3998_v51, %v5420_v50  ;;  %3211 = vmatpush1.bf16.msra.mxu0 %v3210_v6  ;;  %v3026_v51 = vpack.c.bf16 %v5446_v30, %v5444_v2  ;;  %v5489_v54 = vld [vmem:[#allocation19_spill] sm:$0xff]  ;;  %v5491_v50 = vld [vmem:[#allocation30_spill] sm:$0xff]  ;;  %v5499_v2 = vld [vmem:[#allocation5_spill] sm:$0xff] }
  0xc4   :  { %3213 = vmatprep.subr.bf16.mxu0 %v3212_v32  ;;  %v3032_v57 = vpack.c.bf16 %v5473_v49, %v5471_v37  ;;  %v3224_v40 = vpack.c.bf16 %v5477_v39, %v5475_v60  ;;  %v3034_v5 = vpack.c.bf16 %v5481_v20, %v5479_v11  ;;  %v3226_v34 = vpack.c.bf16 %v5485_v29, %v5483_v42  ;;  %v5495_v29 = vld [vmem:[#allocation39_spill] sm:$0xff]  ;;  %v5500_v30 = vld [vmem:[#allocation50_spill] sm:$0xff]  ;;  %v5501_v63 = vld [vmem:[#allocation53_spill] sm:$0xff] }
  0xc5   :  { %3021 = vmatprep.subr.bf16.mxu1 %v3020_v27  ;;  %v5502_v49 = vld [vmem:[#allocation56_spill] sm:$0xff]  ;;  %v5505_v39 = vld [vmem:[#allocation62_spill] sm:$0xff]  ;;  %v5507_v20 = vld [vmem:[#allocation65_spill] sm:$0xff] }
  0xc6   :  { %3023 = vmatpush1.bf16.msra.mxu1 %v3022_v7  ;;  %v5508_v18 = vld [vmem:[#allocation68_spill] sm:$0xff]  ;;  %v5509_v61 = vld [vmem:[#allocation11_spill] sm:$0xff]  ;;  %v5513_v11 = vld [vmem:[#allocation78_spill] sm:$0xff] }
  0xc7   :  { %3215 = vmatpush1.bf16.msra.mxu0 %v3214_v56  ;;  %3025 = vmatprep.subr.bf16.mxu1 %v3024_v45  ;;  %v5510_v37 = vld [vmem:[#allocation72_spill] sm:$0xff]  ;;  %v5511_v60 = vld [vmem:[#allocation75_spill] sm:$0xff]  ;;  %v5514_v58 = vld [vmem:[#allocation81_spill] sm:$0xff] }
  0xc8   :  { %3217 = vmatprep.subr.bf16.mxu0 %v3216_v52  ;;  %v5515_v42 = vld [vmem:[#allocation15_spill] sm:$0xff]  ;;  %v5516_v35 = vld [vmem:[#allocation17_spill] sm:$0xff]  ;;  %v5517_v1 = vld [vmem:[#allocation88_spill] sm:$0xff] }
  0xc9   :  { %v5518_v6 = vld [vmem:[#allocation18_spill] sm:$0xff]  ;;  %v5519_v27 = vld [vmem:[#allocation93_spill] sm:$0xff]  ;;  %v5520_v32 = vld [vmem:[#allocation20_spill] sm:$0xff] }
  0xca   :  { %3027 = vmatpush1.bf16.msra.mxu1 %v3026_v51  ;;  %v5532_v7 = vld [vmem:[#allocation21_spill] sm:$0xff]  ;;  %v5533_v56 = vld [vmem:[#allocation12_spill] sm:$0xff]  ;;  %v5534_v45 = vld [vmem:[#allocation71_spill] sm:$0xff] }
  0xcb   :  { %3219 = vmatpush1.bf16.msra.mxu0 %v3218_v25  ;;  %3029 = vmatprep.subr.bf16.mxu1 %v3028_v4  ;;  %v5535_v52 = vld [vmem:[#allocation77_spill] sm:$0xff]  ;;  %v5536_v51 = vld [vmem:[#allocation14_spill] sm:$0xff]  ;;  %v5537_v25 = vld [vmem:[#allocation23_spill] sm:$0xff] }
  0xcc   :  { %3221 = vmatprep.subr.bf16.mxu0 %v3220_v17  ;;  %v5538_v4 = vld [vmem:[#allocation16_spill] sm:$0xff] }
  0xce   :  { %3031 = vmatpush1.bf16.msra.mxu1 %v3030_v62 }
  0xcf   :  { %3223 = vmatpush1.bf16.msra.mxu0 %v3222_v43  ;;  %3033 = vmatprep.subr.bf16.mxu1 %v3032_v57 }
  0xd0   :  { %3225 = vmatprep.subr.bf16.mxu0 %v3224_v40 }
  0xd2   :  { %3035 = vmatpush1.bf16.msra.mxu1 %v3034_v5 }
  0xd3   :  { %3227 = vmatpush1.bf16.msra.mxu0 %v3226_v34  ;;  %3037 = vmatprep.subr.bf16.mxu1 %v5487_v38 }
  0xd4   :  { %3229 = vmatprep.subr.bf16.mxu0 %v5488_v28 }
  0xd5   :  { %1469 = vmatmul.mubr.f32.vlgmr.msra.gmra.mrb[2].mxu1 %v5489_v54 }
  0xd6   :  { %2324 = vmatmul.mubr.f32.vlgmr.msra.gmra.mrb[2].mxu0 %v5489_v54  ;;  %3039 = vmatpush1.bf16.msra.mxu1 %v5490_v46 }
  0xd7   :  { %3231 = vmatpush1.bf16.msra.mxu0 %v5491_v50  ;;  %3041 = vmatprep.subr.bf16.mxu1 %v5492_v31 }
  0xd8   :  { %3233 = vmatprep.subr.bf16.mxu0 %v5493_v16  ;;  %1571 = vmatprep.mubr.f32.mxu1 %v5174_v14 }
  0xd9   :  { %2426 = vmatprep.mubr.f32.mxu0 %v5174_v14 }
  0xda   :  { %3043 = vmatpush1.bf16.msra.mxu1 %v5494_v47 }
  0xdb   :  { %3235 = vmatpush1.bf16.msra.mxu0 %v5495_v29  ;;  %3045 = vmatprep.subr.bf16.mxu1 %v5496_v19 }
  0xdc   :  { %3237 = vmatprep.subr.bf16.mxu0 %v5497_v53 }
  0xde   :  { %3047 = vmatpush1.bf16.msra.mxu1 %v5498_v23 }
  0xdf   :  { %3239 = vmatpush1.bf16.msra.mxu0 %v5499_v2  ;;  %3049 = vmatprep.subr.bf16.mxu1 %v5500_v30 }
  0xe0   :  { %3241 = vmatprep.subr.bf16.mxu0 %v5501_v63 }
  0xe2   :  { %3051 = vmatpush1.bf16.msra.mxu1 %v5502_v49 }
  0xe3   :  { %3243 = vmatpush1.bf16.msra.mxu0 %v5503_v33  ;;  %3053 = vmatprep.subr.bf16.mxu1 %v5504_v36 }
  0xe4   :  { %3245 = vmatprep.subr.bf16.mxu0 %v5505_v39 }
  0xe6   :  { %3055 = vmatpush1.bf16.msra.mxu1 %v5506_v59 }
  0xe7   :  { %3247 = vmatpush1.bf16.msra.mxu0 %v5507_v20  ;;  %3057 = vmatprep.subr.bf16.mxu1 %v5508_v18 }
  0xe8   :  { %3249 = vmatprep.subr.bf16.mxu0 %v5509_v61 }
  0xea   :  { %3059 = vmatpush1.bf16.msra.mxu1 %v5510_v37 }
  0xeb   :  { %3251 = vmatpush1.bf16.msra.mxu0 %v5511_v60  ;;  %3061 = vmatprep.subr.bf16.mxu1 %v5512_v24 }
  0xec   :  { %3253 = vmatprep.subr.bf16.mxu0 %v5513_v11 }
  0xee   :  { %3063 = vmatpush1.bf16.msra.mxu1 %v5514_v58 }
  0xef   :  { %3255 = vmatpush1.bf16.msra.mxu0 %v5515_v42  ;;  %3065 = vmatprep.subr.bf16.mxu1 %v5516_v35 }
  0xf0   :  { %3257 = vmatprep.subr.bf16.mxu0 %v5517_v1 }
  0xf2   :  { %3067 = vmatpush1.bf16.msra.mxu1 %v5518_v6 }
  0xf3   :  { %3259 = vmatpush1.bf16.msra.mxu0 %v5519_v27  ;;  %3069 = vmatprep.subr.bf16.mxu1 %v4565_v21  ;;  %v5522_v21 = vld [vmem:[#allocation37_spill] sm:$0xff] }
  0xf4   :  { %3261 = vmatprep.subr.bf16.mxu0 %v4571_v41  ;;  %v5521_v41 = vld [vmem:[#allocation36_spill] sm:$0xff] }
  0xf5   :  { %1575 = vmatmul.mubr.f32.vlgmr.msra.gmra.mrb[2].mxu1 %v5520_v32 }
  0xf6   :  { %2430 = vmatmul.mubr.f32.vlgmr.msra.gmra.mrb[2].mxu0 %v5520_v32  ;;  %3071 = vmatpush1.bf16.msra.mxu1 %v4577_v0  ;;  %v5524_v0 = vld [vmem:[#allocation47_spill] sm:$0xff] }
  0xf7   :  { %3263 = vmatpush1.bf16.msra.mxu0 %v4583_v15  ;;  %3073 = vmatprep.subr.bf16.mxu1 %v4589_v13  ;;  %v5523_v15 = vld [vmem:[#allocation44_spill] sm:$0xff]  ;;  %v5525_v13 = vld [vmem:[#allocation49_spill] sm:$0xff] }
  0xf8   :  { %3265 = vmatprep.subr.bf16.mxu0 %v4597_v12  ;;  %1741 = vmatprep.mubr.f32.mxu1 %v5174_v14  ;;  %v5526_v12 = vld [vmem:[#allocation51_spill] sm:$0xff] }
  0xf9   :  { %2596 = vmatprep.mubr.f32.mxu0 %v5174_v14 }
  0xfa   :  { %3075 = vmatpush1.bf16.msra.mxu1 %v4603_v48  ;;  %v5527_v48 = vld [vmem:[#allocation57_spill] sm:$0xff] }
  0xfb   :  { %3267 = vmatpush1.bf16.msra.mxu0 %v4609_v44  ;;  %3077 = vmatprep.subr.bf16.mxu1 %v4615_v10  ;;  %v5528_v44 = vld [vmem:[#allocation58_spill] sm:$0xff]  ;;  %v5529_v10 = vld [vmem:[#allocation59_spill] sm:$0xff] }
  0xfc   :  { %3269 = vmatprep.subr.bf16.mxu0 %v4621_v8  ;;  %v5530_v8 = vld [vmem:[#allocation63_spill] sm:$0xff] }
  0xfe   :  { %3079 = vmatpush1.bf16.msra.mxu1 %v4627_v9  ;;  %v5531_v9 = vld [vmem:[#allocation67_spill] sm:$0xff] }
  0xff   :  { %3271 = vmatpush1.bf16.msra.mxu0 %v5521_v41  ;;  %3081 = vmatprep.subr.bf16.mxu1 %v5522_v21 }
 0x100   :  { %3273 = vmatprep.subr.bf16.mxu0 %v5523_v15 }
 0x102   :  { %3083 = vmatpush1.bf16.msra.mxu1 %v5524_v0 }
 0x103   :  { %3275 = vmatpush1.bf16.msra.mxu0 %v5525_v13  ;;  %3085 = vmatprep.subr.bf16.mxu1 %v5526_v12 }
 0x104   :  { %3277 = vmatprep.subr.bf16.mxu0 %v5527_v48 }
 0x106   :  { %3087 = vmatpush1.bf16.msra.mxu1 %v5528_v44 }
 0x107   :  { %3279 = vmatpush1.bf16.msra.mxu0 %v5529_v10  ;;  %3089 = vmatprep.subr.bf16.mxu1 %v5530_v8 }
 0x108   :  { %3281 = vmatprep.subr.bf16.mxu0 %v5531_v9 }
 0x10a   :  { %3091 = vmatpush1.bf16.msra.mxu1 %v5532_v7 }
 0x10b   :  { %3283 = vmatpush1.bf16.msra.mxu0 %v5533_v56  ;;  %3093 = vmatprep.subr.bf16.mxu1 %v5534_v45 }
 0x10c   :  { %3285 = vmatprep.subr.bf16.mxu0 %v5535_v52 }
 0x10e   :  { %3095 = vmatpush1.bf16.msra.mxu1 %v5536_v51 }
 0x10f   :  { %3287 = vmatpush1.bf16.msra.mxu0 %v5537_v25  ;;  %3097 = vmatprep.subr.bf16.mxu1 %v4737_v3 }
 0x110   :  { %3289 = vmatprep.subr.bf16.mxu0 %v4743_v26  ;;  %v111_v26 = vld [vmem:[%s4914_s1] sm:$0x3f] }
 0x112   :  { %3099 = vmatpush1.bf16.msra.mxu1 %v4749_v55 }
 0x113   :  { %3291 = vmatpush1.bf16.msra.mxu0 %v4755_v22  ;;  %3101 = vmatprep.subr.bf16.mxu1 %v5487_v38 }
 0x114   :  { %3293 = vmatprep.subr.bf16.mxu0 %v5488_v28 }
 0x115   :  { %1743 = vmatmul.mubr.f32.vlgmr.msra.gmra.mrb[2].mxu1 %v5538_v4 }
 0x116   :  { %2598 = vmatmul.mubr.f32.vlgmr.msra.gmra.mrb[2].mxu0 %v5538_v4  ;;  %3103 = vmatpush1.bf16.msra.mxu1 %v5490_v46 }
 0x117   :  { %3295 = vmatpush1.bf16.msra.mxu0 %v5491_v50  ;;  %3105 = vmatprep.subr.bf16.mxu1 %v5492_v31 }
 0x118   :  { %3297 = vmatprep.subr.bf16.mxu0 %v5493_v16  ;;  %1845 = vmatprep.mubr.f32.mxu1 %v5174_v14  ;;  %v3363_v16 = vmov 1983009808  }
 0x119   :  { %2700 = vmatprep.mubr.f32.mxu0 %v5174_v14  ;;  %v113_v14 = vlaneseq }
 0x11a   :  { %3107 = vmatpush1.bf16.msra.mxu1 %v5494_v47  ;;  %v2717_v47 = vunpack.c.l.s4 %v3363_v16 }
 0x11b   :  { %3299 = vmatpush1.bf16.msra.mxu0 %v5495_v29  ;;  %3109 = vmatprep.subr.bf16.mxu1 %v5496_v19  ;;  %v114_v22 = vshrl.u32 %v113_v14, 7 }
 0x11c   :  { %3301 = vmatprep.subr.bf16.mxu0 %v5497_v53 }
 0x11d   :  { %v115_v55 = vsub.s32 0, %v114_v22  ;;  %v119_v3 = vsub.s32 1, %v114_v22  ;;  %v123_v50 = vsub.s32 2, %v114_v22  ;;  %v131_v31 = vsub.s32 4, %v114_v22 }
 0x11e   :  { %3111 = vmatpush1.bf16.msra.mxu1 %v5498_v23  ;;  %v127_v29 = vsub.s32 3, %v114_v22  ;;  %v135_v19 = vsub.s32 5, %v114_v22 }
 0x11f   :  { %3303 = vmatpush1.bf16.msra.mxu0 %v5499_v2  ;;  %3113 = vmatprep.subr.bf16.mxu1 %v5500_v30  ;;  %v116_v17 = vrot.slane %v111_v26, %v115_v55  ;;  %v120_v62 = vrot.slane %v111_v26, %v119_v3  ;;  %v124_v53 = vrot.slane %v111_v26, %v123_v50  ;;  %v2718_v2 = vunpack.c.0.s8 %v2717_v47 }
 0x120   :  { %3305 = vmatprep.subr.bf16.mxu0 %v5501_v63  ;;  %v132_v23 = vrot.slane %v111_v26, %v131_v31  ;;  %v128_v30 = vrot.slane %v111_v26, %v127_v29  ;;  %v136_v63 = vrot.slane %v111_v26, %v135_v19 }
 0x122   :  { %3115 = vmatpush1.bf16.msra.mxu1 %v5502_v49 }
 0x123   :  { %3307 = vmatpush1.bf16.msra.mxu0 %v5503_v33  ;;  %3117 = vmatprep.subr.bf16.mxu1 %v5504_v36 }
 0x124   :  { %3309 = vmatprep.subr.bf16.mxu0 %v5505_v39 }
 0x126   :  { %3119 = vmatpush1.bf16.msra.mxu1 %v5506_v59 }
 0x127   :  { %3311 = vmatpush1.bf16.msra.mxu0 %v5507_v20  ;;  %3121 = vmatprep.subr.bf16.mxu1 %v5508_v18  ;;  %v2721_v18 = vsub.s32 %v2718_v2, %v114_v22 }
 0x128   :  { %3313 = vmatprep.subr.bf16.mxu0 %v5509_v61 }
 0x12a   :  { %3123 = vmatpush1.bf16.msra.mxu1 %v5510_v37 }
 0x12b   :  { %3315 = vmatpush1.bf16.msra.mxu0 %v5511_v60  ;;  %3125 = vmatprep.subr.bf16.mxu1 %v5512_v24 }
 0x12c   :  { %3317 = vmatprep.subr.bf16.mxu0 %v5513_v11 }
 0x12e   :  { %3127 = vmatpush1.bf16.msra.mxu1 %v5514_v58 }
 0x12f   :  { %3319 = vmatpush1.bf16.msra.mxu0 %v5515_v42  ;;  %3129 = vmatprep.subr.bf16.mxu1 %v5516_v35 }
 0x130   :  { %3321 = vmatprep.subr.bf16.mxu0 %v5517_v1 }
 0x132   :  { %3131 = vmatpush1.bf16.msra.mxu1 %v5518_v6 }
 0x133   :  { %3323 = vmatpush1.bf16.msra.mxu0 %v5519_v27 }
 0x135   :  { %1847 = vmatmul.mubr.f32.vlgmr.msra.gmra.mrb[2].mxu1 %v5538_v4 }
 0x136   :  { %2702 = vmatmul.mubr.f32.vlgmr.msra.gmra.mrb[2].mxu0 %v5538_v4 }
 0x13e   :  { %v993_v57 = vpop.f32.mrb[0].mxu0 }
 0x13f   :  { %v995_v34 = vpop.f32.mrb[1].mxu0 }
 0x141   :  { %v615_v43 = vpop.f32.mrb[0].mxu1 }
 0x142   :  { %v3324_v40 = vadd.f32 %v615_v43, %v116_v17  ;;  %v617_v5 = vpop.f32.mrb[1].mxu1 }
 0x143   :  { %v3326_v38 = vadd.f32 %v617_v5, %v120_v62 }
 0x144   :  { %v3325_v28 = vadd.f32 %v3324_v40, %v993_v57 }
 0x145   :  { %v3327_v54 = vadd.f32 %v3326_v38, %v995_v34 }
 0x147   :  { %v2714_v46 = vcombine.low %v3325_v28, %v3327_v54 }
 0x149   :  { %v2722_v11 = vrot.slane %v2714_v46, %v2721_v18 }
 0x208   :  { %v1848_v49 = vpop.f32.mrb[2].mxu1 }
 0x209   :  { %v2703_v33 = vpop.f32.mrb[2].mxu0  ;;  %v3328_v36 = vadd.f32 %v1848_v49, %v124_v53  ;;  %v1850_v59 = vpop.f32.mrb[3].mxu1 }
 0x20a   :  { %v3330_v39 = vadd.f32 %v2703_v33, %v132_v23  ;;  %v2705_v20 = vpop.f32.mrb[3].mxu0  ;;  %v3329_v61 = vadd.f32 %v1850_v59, %v128_v30 }
 0x20b   :  { %v3331_v37 = vadd.f32 %v2705_v20, %v136_v63 }
 0x20c   :  { %v2715_v60 = vcombine.low %v3328_v36, %v3329_v61 }
 0x20d   :  { %v2731_v24 = vcombine.low %v3330_v39, %v3331_v37 }
 0x20e   :  { %v2729_v58 = vrot.slane %v2715_v60, %v2721_v18 }
 0x20f   :  { %2747 = vst.sshfl [vmem:[%s4915_s3 + $0x8] sm:$0x33 pattern:$0x76325410] %v2731_v24 }
 0x210   :  { %v2730_v42 = vcombine.low %v2722_v11, %v2729_v58 }
 0x212   :  { %2741 = vst [vmem:[%s4915_s3] sm:$0xff] %v2730_v42 }

</bundles_post_ra>
